<compile_context>
chip_gen: v5e
topology: v5e:2x2
jax: 0.10.0
libtpu: 0.0.40
codegen_flags: <defaults>
</compile_context>

<pallas_src>
import functools

import numpy as np
import jax
import jax.numpy as jnp
from jax.experimental import pallas as pl
from jax.experimental.pallas import tpu as pltpu

NEG_MASK = -1e30  # finite stand-in for -inf (keeps exp()/online-logsumexp NaN-free)


def _round_up(x, m):
    return ((x + m - 1) // m) * m


def ndpm_kernel(x_ref, w_ref, bd_ref, lp_ref, lj_ref, asg_ref, *, K, Hg_pad, C_pad):
    """One batch-tile of the Ndpm forward.

    x_ref  : [tb, D_pad]          VMEM  (flattened input tile)
    w_ref  : [D_pad, K*(Hg_pad+C_pad)] VMEM  (packed, 128-aligned expert blocks, resident)
    bd_ref : [K, C_pad]           VMEM  (classifier bias; padded lanes hold NEG_MASK)
    lp_ref : [K]                  SMEM  (log prior per expert, scalar reads)
    lj_ref : [tb, C_pad]          VMEM  output log_joint (lane-dense; cols >= C are junk)
    asg_ref: [tb, 1]              VMEM  output assignments (int32)
    """
    tb = x_ref.shape[0]
    stride = Hg_pad + C_pad

    # Single fused MXU pass over all K experts' generative + classifier columns.
    y = jnp.dot(x_ref[...], w_ref[...], preferred_element_type=jnp.float32)

    m_run = s_run = best_s = best_i = None
    for k in range(K):            # static unroll; K is tiny
        base = k * stride         # multiple of 128 -> every slice starts on a vreg boundary
        g = y[:, base:base + Hg_pad]                       # [tb, Hg_pad]; pad cols exactly 0
        logits = y[:, base + Hg_pad:base + stride] + bd_ref[k:k + 1, :]  # pad lanes = -1e30

        # Generative energy: padded columns contribute exactly 0.
        log_evid = -0.5 * jnp.sum(g * g, axis=-1, keepdims=True)         # [tb, 1]

        # Full-vreg log_softmax: padded lanes are ~-1e30, so exp() there is exactly 0.
        mx = jnp.max(logits, axis=-1, keepdims=True)
        z = logits - mx
        log_pred = z - jnp.log(jnp.sum(jnp.exp(z), axis=-1, keepdims=True))  # [tb, C_pad]

        score = log_evid + lp_ref[k]                                      # [tb, 1]
        v = score + log_pred                                              # [tb, C_pad]

        if k == 0:
            m_run = v
            s_run = jnp.ones_like(v)
            best_s = score
            best_i = jnp.zeros((tb, 1), jnp.int32)
        else:
            # Online logsumexp over the expert axis (all values finite by construction).
            m_new = jnp.maximum(m_run, v)
            s_run = s_run * jnp.exp(m_run - m_new) + jnp.exp(v - m_new)
            m_run = m_new
            # Running argmax of score; strict '>' keeps the first maximum
            # (matches jnp.argmax tie-breaking).
            better = score > best_s
            best_s = jnp.where(better, score, best_s)
            best_i = jnp.where(better, jnp.int32(k), best_i)

    lj_ref[...] = m_run + jnp.log(s_run)
    asg_ref[...] = best_i


def pack_ndpm_weights(Wg, Wd, bd):
    """Pack all expert weights into one lane-dense MXU slab.

    Call ONCE (weights are static at inference) and reuse the result — the concat /
    transpose / pad ops here cost more than the kernel itself if run per call.

    Returns:
      w_packed : [D_pad, K*(Hg_pad+C_pad)]  f32, expert k owns columns
                 [k*stride, k*stride+Hg_pad) = Wg_k (zero-padded) and
                 [k*stride+Hg_pad, (k+1)*stride) = Wd_k (zero-padded).
      bd_pad   : [K, C_pad] f32, real bias in the first C lanes, NEG_MASK elsewhere.
    """
    f32 = jnp.float32
    K, D, Hg = Wg.shape
    C = Wd.shape[-1]
    D_pad = _round_up(D, 128)     # contraction dim stays an exact multiple of 128
    Hg_pad = _round_up(Hg, 128)   # per-expert blocks start on vreg boundaries
    C_pad = _round_up(C, 128)

    g = jnp.pad(Wg.astype(f32), ((0, 0), (0, D_pad - D), (0, Hg_pad - Hg)))
    d = jnp.pad(Wd.astype(f32), ((0, 0), (0, D_pad - D), (0, C_pad - C)))
    slab = jnp.concatenate([g, d], axis=2)                       # [K, D_pad, Hg_pad+C_pad]
    w_packed = jnp.transpose(slab, (1, 0, 2)).reshape(D_pad, K * (Hg_pad + C_pad))

    bd_pad = jnp.pad(bd.astype(f32), ((0, 0), (0, C_pad - C)), constant_values=NEG_MASK)
    return w_packed, bd_pad


def ndpm_forward(x_nchw, w_packed, bd_pad, log_prior, num_classes):
    """Returns (log_joint [B, num_classes] f32, assignments [B] i32)."""
    f32 = jnp.float32
    B = x_nchw.shape[0]
    D = int(np.prod(x_nchw.shape[1:]))
    D_pad, N_pad = w_packed.shape
    K, C_pad = bd_pad.shape
    Hg_pad = N_pad // K - C_pad

    # Resident-slab budget guard: the no-tiling design keeps the whole slab (double-
    # buffered) in VMEM; re-tile over experts / features before approaching the scoped
    # VMEM limit (16 MiB default on v5e, 32 MiB on v6e/v7x, 64 MiB physical on v7x).
    assert 4 * D_pad * N_pad <= 6 * 1024 * 1024, (
        "packed weight slab too large for the resident-VMEM design; add an expert/"
        "feature grid axis instead of raising vmem_limit_bytes")

    # Flatten NCHW row-major to [B, D] (matches torch .view(B, -1)).
    x2d = x_nchw.reshape(B, D).astype(f32)
    if D_pad != D:
        x2d = jnp.pad(x2d, ((0, 0), (0, D_pad - D)))

    # Batch tiling: whole batch when small; 256-row 'parallel' tiles when B grows
    # (fills MXU rows, lets v7x's two TensorCores split the grid).
    tb = B if B <= 256 else 256
    B_pad = _round_up(B, tb)
    if B_pad != B:
        x2d = jnp.pad(x2d, ((0, B_pad - B), (0, 0)))
    grid = (B_pad // tb,)

    # Guard against -inf priors from an unused expert (would NaN exp(m - m) otherwise).
    lp = jnp.maximum(log_prior.astype(f32).reshape(K), NEG_MASK)

    cost = pl.CostEstimate(
        flops=2 * B_pad * D_pad * N_pad + 8 * B_pad * N_pad,
        transcendentals=2 * B_pad * K * C_pad,
        bytes_accessed=4 * (D_pad * N_pad + B_pad * D_pad + B_pad * C_pad
                            + B_pad + K * C_pad + K),
    )

    kernel = functools.partial(ndpm_kernel, K=K, Hg_pad=Hg_pad, C_pad=C_pad)
    log_joint, assign = pl.pallas_call(
        kernel,
        out_shape=(jax.ShapeDtypeStruct((B_pad, C_pad), f32),
                   jax.ShapeDtypeStruct((B_pad, 1), jnp.int32)),
        grid=grid,
        in_specs=[
            pl.BlockSpec((tb, D_pad), lambda i: (i, 0)),        # x batch tile
            pl.BlockSpec((D_pad, N_pad), lambda i: (0, 0)),     # weight slab (resident)
            pl.BlockSpec((K, C_pad), lambda i: (0, 0)),         # classifier bias (+mask)
            pl.BlockSpec(memory_space=pltpu.MemorySpace.SMEM),  # log prior scalars
        ],
        out_specs=(pl.BlockSpec((tb, C_pad), lambda i: (i, 0)),
                   pl.BlockSpec((tb, 1), lambda i: (i, 0))),
        compiler_params=pltpu.CompilerParams(dimension_semantics=("parallel",)),
        cost_estimate=cost,
    )(x2d, w_packed, bd_pad, lp)

    return log_joint[:B, :num_classes], assign[:B, 0]


def ndpm_reference(x_nchw, Wg, Wd, bd, log_prior):
    B = x_nchw.shape[0]
    D = int(np.prod(x_nchw.shape[1:]))
    x2d = x_nchw.reshape(B, D).astype(jnp.float32)
    h = jnp.einsum('bd,kdh->bkh', x2d, Wg)
    log_evid = -0.5 * jnp.sum(h * h, axis=-1)                       # [B, K]
    logits = jnp.einsum('bd,kdc->bkc', x2d, Wd) + bd[None]          # [B, K, C]
    log_pred = jax.nn.log_softmax(logits, axis=-1)
    score = log_prior[None, :] + log_evid                           # [B, K]
    assignments = jnp.argmax(score, axis=1).astype(jnp.int32)
    log_joint = jax.scipy.special.logsumexp(score[:, :, None] + log_pred, axis=1)
    return log_joint, assignments


if __name__ == "__main__":
    B, Cin, Hsp, Wsp = 2, 4, 16, 16          # NCHW input
    D = Cin * Hsp * Wsp                      # 1024
    K = 3                                    # real experts (module list has 1 dummy + K)
    Hg = 32                                  # generative hidden width
    C = 10                                   # classifier classes

    key = jax.random.PRNGKey(0)
    kx, kg, kd, kb = jax.random.split(key, 4)
    x = jax.random.normal(kx, (B, Cin, Hsp, Wsp), dtype=jnp.float32)
    Wg = 0.02 * jax.random.normal(kg, (K, D, Hg), dtype=jnp.float32)
    Wd = 0.02 * jax.random.normal(kd, (K, D, C), dtype=jnp.float32)
    bd = 0.1 * jax.random.normal(kb, (K, C), dtype=jnp.float32)

    # CumulativePrior stand-in: deterministic pseudo-counts for [dummy, 1..K];
    # log_prior = (-nl_prior)[1:], renormalized with logsumexp (as in forward()).
    counts = jnp.arange(1, K + 2, dtype=jnp.float32)                # [1+K]
    log_prior = jnp.log(counts / jnp.sum(counts))[1:]
    log_prior = log_prior - jax.scipy.special.logsumexp(log_prior)  # [K]

    # Pack the expert weights ONCE (hoisted out of the per-call forward path).
    w_packed, bd_pad = jax.block_until_ready(pack_ndpm_weights(Wg, Wd, bd))

    log_joint, assignments = ndpm_forward(x, w_packed, bd_pad, log_prior, num_classes=C)
    jax.block_until_ready((log_joint, assignments))

    ref_lj, ref_asg = ndpm_reference(x, Wg, Wd, bd, log_prior)
    np.testing.assert_allclose(np.asarray(log_joint), np.asarray(ref_lj),
                               rtol=1e-4, atol=1e-4)
    np.testing.assert_array_equal(np.asarray(assignments), np.asarray(ref_asg))

    print("KERNEL_OK")
</pallas_src>

<mosaic_0001>
module attributes {stable_mosaic.version = 11 : i64} {
  func.func @ndpm_kernel(%arg0: i32, %arg1: memref<2x1024xf32, #tpu.memory_space<vmem>>, %arg2: memref<1024x768xf32, #tpu.memory_space<vmem>>, %arg3: memref<3x128xf32, #tpu.memory_space<vmem>>, %arg4: memref<3xf32, #tpu.memory_space<smem>>, %arg5: memref<2x128xf32, #tpu.memory_space<vmem>>, %arg6: memref<2x1xi32, #tpu.memory_space<vmem>>) attributes {dimension_semantics = [#tpu.dimension_semantics<parallel>], iteration_bounds = array<i64: 1>, scalar_prefetch = 0 : i64, scratch_operands = 0 : i64, tpu.core_type = #tpu.core_type<tc>, window_params = [{transform_indices = @transform_0, window_bounds = array<i64: 2, 1024>}, {pipeline_mode = #tpu.pipeline_mode<synchronous>, transform_indices = @transform_1, window_bounds = array<i64: 1024, 768>}, {pipeline_mode = #tpu.pipeline_mode<synchronous>, transform_indices = @transform_2, window_bounds = array<i64: 3, 128>}, {transform_indices = @transform_3, window_bounds = array<i64: 3>}, {transform_indices = @transform_4, window_bounds = array<i64: 2, 128>}, {transform_indices = @transform_5, window_bounds = array<i64: 2, 1>}]} {
    %c0 = arith.constant 0 : index
    %c0_0 = arith.constant 0 : index
    %0 = vector.load %arg1[%c0, %c0_0] : memref<2x1024xf32, #tpu.memory_space<vmem>>, vector<2x1024xf32>
    %c0_1 = arith.constant 0 : index
    %c0_2 = arith.constant 0 : index
    %1 = vector.load %arg2[%c0_1, %c0_2] : memref<1024x768xf32, #tpu.memory_space<vmem>>, vector<1024x768xf32>
    %cst = arith.constant dense<0.000000e+00> : vector<2x768xf32>
    %2 = tpu.matmul %0, %1, %cst {dimension_numbers = #tpu.dot_dimension_numbers<[1], [0], [0], [1], [0, 0, 1, 1], [], []>} : vector<2x1024xf32>, vector<1024x768xf32>, vector<2x768xf32> -> vector<2x768xf32>
    %3 = vector.extract_strided_slice %2 {offsets = [0, 0], sizes = [2, 128], strides = [1, 1]} : vector<2x768xf32> to vector<2x128xf32>
    %4 = vector.extract_strided_slice %2 {offsets = [0, 128], sizes = [2, 128], strides = [1, 1]} : vector<2x768xf32> to vector<2x128xf32>
    %c0_3 = arith.constant 0 : index
    %c0_4 = arith.constant 0 : index
    %5 = vector.load %arg3[%c0_3, %c0_4] : memref<3x128xf32, #tpu.memory_space<vmem>>, vector<1x128xf32>
    %6 = vector.broadcast %5 : vector<1x128xf32> to vector<2x128xf32>
    %7 = arith.addf %4, %6 : vector<2x128xf32>
    %8 = arith.mulf %3, %3 : vector<2x128xf32>
    %cst_5 = arith.constant dense<0.000000e+00> : vector<2xf32>
    %9 = vector.multi_reduction <add>, %8, %cst_5 [1] : vector<2x128xf32> to vector<2xf32>
    %10 = vector.shape_cast %9 : vector<2xf32> to vector<2x1xf32>
    %cst_6 = arith.constant -5.000000e-01 : f32
    %11 = vector.broadcast %cst_6 : f32 to vector<2x1xf32>
    %12 = arith.mulf %11, %10 : vector<2x1xf32>
    %cst_7 = arith.constant dense<0xFF800000> : vector<2xf32>
    %13 = vector.multi_reduction <maximumf>, %7, %cst_7 [1] : vector<2x128xf32> to vector<2xf32>
    %14 = vector.shape_cast %13 : vector<2xf32> to vector<2x1xf32>
    %15 = vector.broadcast %14 : vector<2x1xf32> to vector<2x128xf32>
    %16 = arith.subf %7, %15 : vector<2x128xf32>
    %17 = math.exp %16 : vector<2x128xf32>
    %cst_8 = arith.constant dense<0.000000e+00> : vector<2xf32>
    %18 = vector.multi_reduction <add>, %17, %cst_8 [1] : vector<2x128xf32> to vector<2xf32>
    %19 = vector.shape_cast %18 : vector<2xf32> to vector<2x1xf32>
    %20 = math.log %19 : vector<2x1xf32>
    %21 = vector.broadcast %20 : vector<2x1xf32> to vector<2x128xf32>
    %22 = arith.subf %16, %21 : vector<2x128xf32>
    %c0_9 = arith.constant 0 : index
    %23 = memref.load %arg4[%c0_9] : memref<3xf32, #tpu.memory_space<smem>>
    %24 = vector.broadcast %23 : f32 to vector<2x1xf32>
    %25 = arith.addf %12, %24 : vector<2x1xf32>
    %26 = vector.broadcast %25 : vector<2x1xf32> to vector<2x128xf32>
    %27 = arith.addf %26, %22 : vector<2x128xf32>
    %cst_10 = arith.constant 1.000000e+00 : f32
    %28 = vector.broadcast %cst_10 : f32 to vector<2x128xf32>
    %c0_i32 = arith.constant 0 : i32
    %29 = vector.broadcast %c0_i32 : i32 to vector<2x1xi32>
    %30 = vector.extract_strided_slice %2 {offsets = [0, 256], sizes = [2, 128], strides = [1, 1]} : vector<2x768xf32> to vector<2x128xf32>
    %31 = vector.extract_strided_slice %2 {offsets = [0, 384], sizes = [2, 128], strides = [1, 1]} : vector<2x768xf32> to vector<2x128xf32>
    %c1 = arith.constant 1 : index
    %c0_11 = arith.constant 0 : index
    %32 = vector.load %arg3[%c1, %c0_11] : memref<3x128xf32, #tpu.memory_space<vmem>>, vector<1x128xf32>
    %33 = vector.broadcast %32 : vector<1x128xf32> to vector<2x128xf32>
    %34 = arith.addf %31, %33 : vector<2x128xf32>
    %35 = arith.mulf %30, %30 : vector<2x128xf32>
    %cst_12 = arith.constant dense<0.000000e+00> : vector<2xf32>
    %36 = vector.multi_reduction <add>, %35, %cst_12 [1] : vector<2x128xf32> to vector<2xf32>
    %37 = vector.shape_cast %36 : vector<2xf32> to vector<2x1xf32>
    %cst_13 = arith.constant -5.000000e-01 : f32
    %38 = vector.broadcast %cst_13 : f32 to vector<2x1xf32>
    %39 = arith.mulf %38, %37 : vector<2x1xf32>
    %cst_14 = arith.constant dense<0xFF800000> : vector<2xf32>
    %40 = vector.multi_reduction <maximumf>, %34, %cst_14 [1] : vector<2x128xf32> to vector<2xf32>
    %41 = vector.shape_cast %40 : vector<2xf32> to vector<2x1xf32>
    %42 = vector.broadcast %41 : vector<2x1xf32> to vector<2x128xf32>
    %43 = arith.subf %34, %42 : vector<2x128xf32>
    %44 = math.exp %43 : vector<2x128xf32>
    %cst_15 = arith.constant dense<0.000000e+00> : vector<2xf32>
    %45 = vector.multi_reduction <add>, %44, %cst_15 [1] : vector<2x128xf32> to vector<2xf32>
    %46 = vector.shape_cast %45 : vector<2xf32> to vector<2x1xf32>
    %47 = math.log %46 : vector<2x1xf32>
    %48 = vector.broadcast %47 : vector<2x1xf32> to vector<2x128xf32>
    %49 = arith.subf %43, %48 : vector<2x128xf32>
    %c1_16 = arith.constant 1 : index
    %50 = memref.load %arg4[%c1_16] : memref<3xf32, #tpu.memory_space<smem>>
    %51 = vector.broadcast %50 : f32 to vector<2x1xf32>
    %52 = arith.addf %39, %51 : vector<2x1xf32>
    %53 = vector.broadcast %52 : vector<2x1xf32> to vector<2x128xf32>
    %54 = arith.addf %53, %49 : vector<2x128xf32>
    %55 = arith.maximumf %27, %54 : vector<2x128xf32>
    %56 = arith.subf %27, %55 : vector<2x128xf32>
    %57 = math.exp %56 : vector<2x128xf32>
    %58 = arith.mulf %28, %57 : vector<2x128xf32>
    %59 = arith.subf %54, %55 : vector<2x128xf32>
    %60 = math.exp %59 : vector<2x128xf32>
    %61 = arith.addf %58, %60 : vector<2x128xf32>
    %62 = arith.cmpf ogt, %52, %25 : vector<2x1xf32>
    %63 = arith.select %62, %52, %25 : vector<2x1xi1>, vector<2x1xf32>
    %c1_i32 = arith.constant 1 : i32
    %64 = vector.broadcast %c1_i32 : i32 to vector<2x1xi32>
    %65 = arith.select %62, %64, %29 : vector<2x1xi1>, vector<2x1xi32>
    %66 = vector.extract_strided_slice %2 {offsets = [0, 512], sizes = [2, 128], strides = [1, 1]} : vector<2x768xf32> to vector<2x128xf32>
    %67 = vector.extract_strided_slice %2 {offsets = [0, 640], sizes = [2, 128], strides = [1, 1]} : vector<2x768xf32> to vector<2x128xf32>
    %c2 = arith.constant 2 : index
    %c0_17 = arith.constant 0 : index
    %68 = vector.load %arg3[%c2, %c0_17] : memref<3x128xf32, #tpu.memory_space<vmem>>, vector<1x128xf32>
    %69 = vector.broadcast %68 : vector<1x128xf32> to vector<2x128xf32>
    %70 = arith.addf %67, %69 : vector<2x128xf32>
    %71 = arith.mulf %66, %66 : vector<2x128xf32>
    %cst_18 = arith.constant dense<0.000000e+00> : vector<2xf32>
    %72 = vector.multi_reduction <add>, %71, %cst_18 [1] : vector<2x128xf32> to vector<2xf32>
    %73 = vector.shape_cast %72 : vector<2xf32> to vector<2x1xf32>
    %cst_19 = arith.constant -5.000000e-01 : f32
    %74 = vector.broadcast %cst_19 : f32 to vector<2x1xf32>
    %75 = arith.mulf %74, %73 : vector<2x1xf32>
    %cst_20 = arith.constant dense<0xFF800000> : vector<2xf32>
    %76 = vector.multi_reduction <maximumf>, %70, %cst_20 [1] : vector<2x128xf32> to vector<2xf32>
    %77 = vector.shape_cast %76 : vector<2xf32> to vector<2x1xf32>
    %78 = vector.broadcast %77 : vector<2x1xf32> to vector<2x128xf32>
    %79 = arith.subf %70, %78 : vector<2x128xf32>
    %80 = math.exp %79 : vector<2x128xf32>
    %cst_21 = arith.constant dense<0.000000e+00> : vector<2xf32>
    %81 = vector.multi_reduction <add>, %80, %cst_21 [1] : vector<2x128xf32> to vector<2xf32>
    %82 = vector.shape_cast %81 : vector<2xf32> to vector<2x1xf32>
    %83 = math.log %82 : vector<2x1xf32>
    %84 = vector.broadcast %83 : vector<2x1xf32> to vector<2x128xf32>
    %85 = arith.subf %79, %84 : vector<2x128xf32>
    %c2_22 = arith.constant 2 : index
    %86 = memref.load %arg4[%c2_22] : memref<3xf32, #tpu.memory_space<smem>>
    %87 = vector.broadcast %86 : f32 to vector<2x1xf32>
    %88 = arith.addf %75, %87 : vector<2x1xf32>
    %89 = vector.broadcast %88 : vector<2x1xf32> to vector<2x128xf32>
    %90 = arith.addf %89, %85 : vector<2x128xf32>
    %91 = arith.maximumf %55, %90 : vector<2x128xf32>
    %92 = arith.subf %55, %91 : vector<2x128xf32>
    %93 = math.exp %92 : vector<2x128xf32>
    %94 = arith.mulf %61, %93 : vector<2x128xf32>
    %95 = arith.subf %90, %91 : vector<2x128xf32>
    %96 = math.exp %95 : vector<2x128xf32>
    %97 = arith.addf %94, %96 : vector<2x128xf32>
    %98 = arith.cmpf ogt, %88, %63 : vector<2x1xf32>
    %c2_i32 = arith.constant 2 : i32
    %99 = vector.broadcast %c2_i32 : i32 to vector<2x1xi32>
    %100 = arith.select %98, %99, %65 : vector<2x1xi1>, vector<2x1xi32>
    %101 = math.log %97 : vector<2x128xf32>
    %102 = arith.addf %91, %101 : vector<2x128xf32>
    %c0_23 = arith.constant 0 : index
    %c0_24 = arith.constant 0 : index
    %103 = vector.load %arg5[%c0_23, %c0_24] : memref<2x128xf32, #tpu.memory_space<vmem>>, vector<2x128xf32>
    tpu.vector_store %arg5[%c0_23, %c0_24], %102 {strides = array<i32>} : memref<2x128xf32, #tpu.memory_space<vmem>>, vector<2x128xf32>,
    %c0_25 = arith.constant 0 : index
    %c0_26 = arith.constant 0 : index
    %104 = vector.load %arg6[%c0_25, %c0_26] : memref<2x1xi32, #tpu.memory_space<vmem>>, vector<2x1xi32>
    tpu.vector_store %arg6[%c0_25, %c0_26], %100 {strides = array<i32>} : memref<2x1xi32, #tpu.memory_space<vmem>>, vector<2x1xi32>,
    return
  }
  func.func @transform_0(%arg0: i32) -> (i32, i32) {
    %c0_i32 = arith.constant 0 : i32
    %c0_i32_0 = arith.constant 0 : i32
    return %arg0, %c0_i32 : i32, i32
  }
  func.func @transform_1(%arg0: i32) -> (i32, i32) {
    %c0_i32 = arith.constant 0 : i32
    %c0_i32_0 = arith.constant 0 : i32
    %c0_i32_1 = arith.constant 0 : i32
    return %c0_i32, %c0_i32_0 : i32, i32
  }
  func.func @transform_2(%arg0: i32) -> (i32, i32) {
    %c0_i32 = arith.constant 0 : i32
    %c0_i32_0 = arith.constant 0 : i32
    %c0_i32_1 = arith.constant 0 : i32
    return %c0_i32, %c0_i32_0 : i32, i32
  }
  func.func @transform_3(%arg0: i32) -> i32 {
    %c0_i32 = arith.constant 0 : i32
    %c0_i32_0 = arith.constant 0 : i32
    return %c0_i32 : i32
  }
  func.func @transform_4(%arg0: i32) -> (i32, i32) {
    %c0_i32 = arith.constant 0 : i32
    %c0_i32_0 = arith.constant 0 : i32
    return %arg0, %c0_i32 : i32, i32
  }
  func.func @transform_5(%arg0: i32) -> (i32, i32) {
    %c0_i32 = arith.constant 0 : i32
    %c0_i32_0 = arith.constant 0 : i32
    return %arg0, %c0_i32 : i32, i32
  }
}

</mosaic_0001>

<bundles_post_ra>
// kernel: tpu_custom_call.1
= control target key start
LH: loop header
LB: loop body
LE: loop exit
PB: predicated region body
PF: predicated region fallthrough
CT: control target
= control target key end

     0   :  { %11 = vsyncpa [#allocation3], 0  ;;  %s2291_s0 = inlined_call_operand.hbm [shape: f32[2,1024], index: 0, kind: input, shape index: {}]   ;;  %s2292_s1 = inlined_call_operand.hbm [shape: f32[1024,768], index: 1, kind: input, shape index: {}]   ;;  %s2293_s2 = inlined_call_operand.hbm [shape: f32[3,128], index: 2, kind: input, shape index: {}]   ;;  %s2294_s3 = inlined_call_operand.hbm [shape: f32[3], index: 3, kind: input, shape index: {}]   ;;  %s2295_s4 = inlined_call_operand.hbm [shape: f32[2,128], index: 4, kind: output, shape index: {0}]   ;;  %s2296_s5 = inlined_call_operand.vmem [shape: s32[2,1], index: 5, kind: output, shape index: {1}]  }
   0x1   :  { %12 = vsyncpa [#allocation7], 0 }
   0x2   :  { %13 = vsyncpa [#allocation5], 0  ;;  %s30_s20 = sshll.u32 %s2292_s1, 4  ;;  %s31_s20 = int_to_ptr.hbm [resolvable:$true] %s30_s20 }
   0x3   :  { %14 = vsyncpa [#allocation4], 0  ;;  %s2118_s21 = smov [#allocation6]   ;;  %s20_s25 = sshll.u32 %s2291_s0, 4  ;;  %s21_s25 = int_to_ptr.hbm [resolvable:$true] %s20_s25 }
   0x4   :  { %s32_s22 = sshll.u32 %s2118_s21, 4  ;;  %s2119_s26 = smov 768   ;;  %s33_s22 = int_to_ptr.vmem [resolvable:$true] %s32_s22 }
   0x5   :  { %s2120_s27 = smov 48   ;;  %s2121_s28 = smov [#allocation2]  }
   0x6   :  { %38 = dma.hbm_to_vmem [thread:$0]  %s31_s20, 98304, %s33_s22, [#allocation7], %s2119_s26, %s2119_s26, %s2120_s27  }
   0x7   :  { %s22_s29 = sshll.u32 %s2121_s28, 4  ;;  %s44_s7 = sshll.u32 %s2293_s2, 4  ;;  %s23_s29 = int_to_ptr.vmem [resolvable:$true] %s22_s29  ;;  %s45_s7 = int_to_ptr.hbm [resolvable:$true] %s44_s7 }
   0x8   :  { %25 = dma.hbm_to_vmem [thread:$0]  %s21_s25, 256, %s23_s29, [#allocation3]  }
   0x9   :  { %s55_s9 = sshll.u32 %s2294_s3, 4  ;;  %s2122_s10 = smov [#allocation8]   ;;  %s56_s9 = int_to_ptr.hbm [resolvable:$true] %s55_s9 }
   0xa   :  { %s46_s11 = sshll.u32 %s2122_s10, 4  ;;  %s2123_s0 = smov [#allocation9]   ;;  %s47_s11 = int_to_ptr.vmem [resolvable:$true] %s46_s11 }
   0xb   :  { %49 = dma.hbm_to_vmem [thread:$0]  %s45_s7, 64, %s47_s11, [#allocation7]  }
   0xc   :  { %58 = dma.hbm_to_smem %s56_s9, 16, %s2123_s0, [#allocation5]  }
   0xd   :  { %2110 = dma.done.wait [#allocation3], 256  }
   0xe   :  { %2111 = vsyncadd [#allocation3], 4294967040 }
   0xf   :  { %2112 = dma.done.wait [#allocation7], 98368  }
  0x10   :  { %2113 = vsyncadd [#allocation7], 4294868928 }
  0x11   :  { %2114 = dma.done.wait [#allocation5], 16  }
  0x12   :  { %2115 = vsyncadd [#allocation5], 4294967280 }
  0x13   :  { %75 = sfence }
  0x14   :  { %v168_v0 = vld [vmem:[#allocation6 + $0x2d0] sm:$0xff]  ;;  %v162_v2 = vld [vmem:[#allocation6 + $0x2a0] sm:$0xff]  ;;  %vm1831_vm0 = vcmask 1041408   ;;  %s1951_s2 = sld [smem:[#allocation9 + $0x1]]  ;;  %vm1926_vm2 = vcmask 1024   ;;  %s2125_s15 = smov [#allocation10]  }
  0x15   :  { %v360_v1 = vld [vmem:[#allocation6 + $0x8d0] sm:$0xff]  ;;  %867 = vmatpush.msra.mxu0 %v168_v0  ;;  %v354_v4 = vld [vmem:[#allocation6 + $0x8a0] sm:$0xff]  ;;  %s1848_s3 = sld [smem:[#allocation9]]  ;;  %s1933_s16 = sshll.u32 %s2125_s15, 4  ;;  %s1934_s16 = int_to_ptr.vmem [resolvable:$true] %s1933_s16 }
  0x16   :  { %907 = vmatpush.msra.mxu2 %v360_v1  ;;  %v264_v3 = vld [vmem:[#allocation6 + $0x5d0] sm:$0xff]  ;;  %v258_v7 = vld [vmem:[#allocation6 + $0x5a0] sm:$0xff]  ;;  %s1952_s12 = sld [smem:[#allocation9 + $0x2]]  ;;  %s1935_s18 = sshll.u32 %s2295_s4, 4  ;;  %s1936_s18 = int_to_ptr.hbm [resolvable:$true] %s1935_s18 }
  0x17   :  { %v456_v5 = vld [vmem:[#allocation6 + $0xbd0] sm:$0xff]  ;;  %887 = vmatpush.msra.mxu1 %v264_v3  ;;  %868 = vmatpush.msra.mxu0 %v162_v2  ;;  %v450_v9 = vld [vmem:[#allocation6 + $0xba0] sm:$0xff] }
  0x18   :  { %927 = vmatpush.msra.mxu3 %v456_v5  ;;  %v156_v6 = vld [vmem:[#allocation6 + $0x270] sm:$0xff]  ;;  %908 = vmatpush.msra.mxu2 %v354_v4  ;;  %v150_v11 = vld [vmem:[#allocation6 + $0x240] sm:$0xff] }
  0x19   :  { %v348_v8 = vld [vmem:[#allocation6 + $0x870] sm:$0xff]  ;;  %888 = vmatpush.msra.mxu1 %v258_v7  ;;  %v342_v12 = vld [vmem:[#allocation6 + $0x840] sm:$0xff]  ;;  %869 = vmatpush.msra.mxu0 %v156_v6 }
  0x1a   :  { %v252_v10 = vld [vmem:[#allocation6 + $0x570] sm:$0xff]  ;;  %928 = vmatpush.msra.mxu3 %v450_v9  ;;  %909 = vmatpush.msra.mxu2 %v348_v8  ;;  %v246_v14 = vld [vmem:[#allocation6 + $0x540] sm:$0xff] }
  0x1b   :  { %v444_v13 = vld [vmem:[#allocation6 + $0xb70] sm:$0xff]  ;;  %v438_v15 = vld [vmem:[#allocation6 + $0xb40] sm:$0xff]  ;;  %889 = vmatpush.msra.mxu1 %v252_v10  ;;  %870 = vmatpush.msra.mxu0 %v150_v11 }
  0x1c   :  { %929 = vmatpush.msra.mxu3 %v444_v13  ;;  %v144_v16 = vld [vmem:[#allocation6 + $0x210] sm:$0xff]  ;;  %910 = vmatpush.msra.mxu2 %v342_v12  ;;  %v138_v20 = vld [vmem:[#allocation6 + $0x1e0] sm:$0xff] }
  0x1d   :  { %v336_v17 = vld [vmem:[#allocation6 + $0x810] sm:$0xff]  ;;  %890 = vmatpush.msra.mxu1 %v246_v14  ;;  %v330_v21 = vld [vmem:[#allocation6 + $0x7e0] sm:$0xff]  ;;  %871 = vmatpush.msra.mxu0 %v144_v16 }
  0x1e   :  { %v240_v18 = vld [vmem:[#allocation6 + $0x510] sm:$0xff]  ;;  %930 = vmatpush.msra.mxu3 %v438_v15  ;;  %911 = vmatpush.msra.mxu2 %v336_v17  ;;  %v234_v22 = vld [vmem:[#allocation6 + $0x4e0] sm:$0xff] }
  0x1f   :  { %v432_v19 = vld [vmem:[#allocation6 + $0xb10] sm:$0xff]  ;;  %v426_v23 = vld [vmem:[#allocation6 + $0xae0] sm:$0xff]  ;;  %891 = vmatpush.msra.mxu1 %v240_v18  ;;  %872 = vmatpush.msra.mxu0 %v138_v20 }
  0x20   :  { %931 = vmatpush.msra.mxu3 %v432_v19  ;;  %v132_v24 = vld [vmem:[#allocation6 + $0x1b0] sm:$0xff]  ;;  %912 = vmatpush.msra.mxu2 %v330_v21  ;;  %v126_v28 = vld [vmem:[#allocation6 + $0x180] sm:$0xff] }
  0x21   :  { %v324_v25 = vld [vmem:[#allocation6 + $0x7b0] sm:$0xff]  ;;  %892 = vmatpush.msra.mxu1 %v234_v22  ;;  %v318_v29 = vld [vmem:[#allocation6 + $0x780] sm:$0xff]  ;;  %873 = vmatpush.msra.mxu0 %v132_v24 }
  0x22   :  { %v228_v26 = vld [vmem:[#allocation6 + $0x4b0] sm:$0xff]  ;;  %932 = vmatpush.msra.mxu3 %v426_v23  ;;  %913 = vmatpush.msra.mxu2 %v324_v25  ;;  %v222_v30 = vld [vmem:[#allocation6 + $0x480] sm:$0xff] }
  0x23   :  { %v420_v27 = vld [vmem:[#allocation6 + $0xab0] sm:$0xff]  ;;  %v414_v31 = vld [vmem:[#allocation6 + $0xa80] sm:$0xff]  ;;  %893 = vmatpush.msra.mxu1 %v228_v26  ;;  %874 = vmatpush.msra.mxu0 %v126_v28 }
  0x24   :  { %933 = vmatpush.msra.mxu3 %v420_v27  ;;  %v120_v32 = vld [vmem:[#allocation6 + $0x150] sm:$0xff]  ;;  %914 = vmatpush.msra.mxu2 %v318_v29  ;;  %v114_v36 = vld [vmem:[#allocation6 + $0x120] sm:$0xff] }
  0x25   :  { %v312_v33 = vld [vmem:[#allocation6 + $0x750] sm:$0xff]  ;;  %894 = vmatpush.msra.mxu1 %v222_v30  ;;  %v306_v37 = vld [vmem:[#allocation6 + $0x720] sm:$0xff]  ;;  %875 = vmatpush.msra.mxu0 %v120_v32 }
  0x26   :  { %v216_v34 = vld [vmem:[#allocation6 + $0x450] sm:$0xff]  ;;  %934 = vmatpush.msra.mxu3 %v414_v31  ;;  %915 = vmatpush.msra.mxu2 %v312_v33  ;;  %v210_v38 = vld [vmem:[#allocation6 + $0x420] sm:$0xff] }
  0x27   :  { %v408_v35 = vld [vmem:[#allocation6 + $0xa50] sm:$0xff]  ;;  %v402_v39 = vld [vmem:[#allocation6 + $0xa20] sm:$0xff]  ;;  %895 = vmatpush.msra.mxu1 %v216_v34  ;;  %876 = vmatpush.msra.mxu0 %v114_v36 }
  0x28   :  { %935 = vmatpush.msra.mxu3 %v408_v35  ;;  %v108_v40 = vld [vmem:[#allocation6 + $0xf0] sm:$0xff]  ;;  %916 = vmatpush.msra.mxu2 %v306_v37  ;;  %v102_v44 = vld [vmem:[#allocation6 + $0xc0] sm:$0xff]  ;;  %v77_v35 = vld [vmem:[#allocation2 + $0x8] sm:$0xff] }
  0x29   :  { %v300_v41 = vld [vmem:[#allocation6 + $0x6f0] sm:$0xff]  ;;  %896 = vmatpush.msra.mxu1 %v210_v38  ;;  %v294_v45 = vld [vmem:[#allocation6 + $0x6c0] sm:$0xff]  ;;  %877 = vmatpush.msra.mxu0 %v108_v40  ;;  %850 = vst [vmem:[#allocation1 + $0x20] ss:$4 sm:$0xff] %v77_v35  ;;  %v427_v35 = vld [vmem:[#allocation6 + $0xae8] sm:$0xff] }
  0x2a   :  { %v204_v42 = vld [vmem:[#allocation6 + $0x3f0] sm:$0xff]  ;;  %936 = vmatpush.msra.mxu3 %v402_v39  ;;  %917 = vmatpush.msra.mxu2 %v300_v41  ;;  %v198_v46 = vld [vmem:[#allocation6 + $0x3c0] sm:$0xff] }
  0x2b   :  { %v396_v43 = vld [vmem:[#allocation6 + $0x9f0] sm:$0xff]  ;;  %v390_v47 = vld [vmem:[#allocation6 + $0x9c0] sm:$0xff]  ;;  %897 = vmatpush.msra.mxu1 %v204_v42  ;;  %878 = vmatpush.msra.mxu0 %v102_v44 }
  0x2c   :  { %937 = vmatpush.msra.mxu3 %v396_v43  ;;  %v96_v48 = vld [vmem:[#allocation6 + $0x90] sm:$0xff]  ;;  %918 = vmatpush.msra.mxu2 %v294_v45  ;;  %v90_v52 = vld [vmem:[#allocation6 + $0x60] sm:$0xff] }
  0x2d   :  { %v288_v49 = vld [vmem:[#allocation6 + $0x690] sm:$0xff]  ;;  %898 = vmatpush.msra.mxu1 %v198_v46  ;;  %v282_v53 = vld [vmem:[#allocation6 + $0x660] sm:$0xff]  ;;  %879 = vmatpush.msra.mxu0 %v96_v48 }
  0x2e   :  { %v192_v50 = vld [vmem:[#allocation6 + $0x390] sm:$0xff]  ;;  %938 = vmatpush.msra.mxu3 %v390_v47  ;;  %919 = vmatpush.msra.mxu2 %v288_v49  ;;  %v186_v54 = vld [vmem:[#allocation6 + $0x360] sm:$0xff] }
  0x2f   :  { %v384_v51 = vld [vmem:[#allocation6 + $0x990] sm:$0xff]  ;;  %v378_v55 = vld [vmem:[#allocation6 + $0x960] sm:$0xff]  ;;  %899 = vmatpush.msra.mxu1 %v192_v50  ;;  %880 = vmatpush.msra.mxu0 %v90_v52 }
  0x30   :  { %939 = vmatpush.msra.mxu3 %v384_v51  ;;  %v84_v56 = vld [vmem:[#allocation6 + $0x30] sm:$0xff]  ;;  %920 = vmatpush.msra.mxu2 %v282_v53  ;;  %v78_v60 = vld [vmem:[#allocation6] sm:$0xff] }
  0x31   :  { %v276_v57 = vld [vmem:[#allocation6 + $0x630] sm:$0xff]  ;;  %900 = vmatpush.msra.mxu1 %v186_v54  ;;  %v270_v61 = vld [vmem:[#allocation6 + $0x600] sm:$0xff]  ;;  %881 = vmatpush.msra.mxu0 %v84_v56 }
  0x32   :  { %v180_v58 = vld [vmem:[#allocation6 + $0x330] sm:$0xff]  ;;  %940 = vmatpush.msra.mxu3 %v378_v55  ;;  %921 = vmatpush.msra.mxu2 %v276_v57  ;;  %v174_v0 = vld [vmem:[#allocation6 + $0x300] sm:$0xff] }
  0x33   :  { %v372_v59 = vld [vmem:[#allocation6 + $0x930] sm:$0xff]  ;;  %901 = vmatpush.msra.mxu1 %v180_v58  ;;  %v366_v1 = vld [vmem:[#allocation6 + $0x900] sm:$0xff]  ;;  %882 = vmatpush.msra.mxu0 %v78_v60 }
  0x34   :  { %v552_v62 = vld [vmem:[#allocation6 + $0xed0] sm:$0xff]  ;;  %941 = vmatpush.msra.mxu3 %v372_v59  ;;  %922 = vmatpush.msra.mxu2 %v270_v61  ;;  %v546_v2 = vld [vmem:[#allocation6 + $0xea0] sm:$0xff] }
  0x35   :  { %v744_v63 = vld [vmem:[#allocation6 + $0x14d0] sm:$0xff]  ;;  %947 = vmatpush.msrb.mxu0 %v552_v62  ;;  %v738_v4 = vld [vmem:[#allocation6 + $0x14a0] sm:$0xff]  ;;  %902 = vmatpush.msra.mxu1 %v174_v0 }
  0x36   :  { %v648_v3 = vld [vmem:[#allocation6 + $0x11d0] sm:$0xff]  ;;  %987 = vmatpush.msrb.mxu2 %v744_v63  ;;  %942 = vmatpush.msra.mxu3 %v366_v1  ;;  %v642_v7 = vld [vmem:[#allocation6 + $0x11a0] sm:$0xff] }
  0x37   :  { %v840_v5 = vld [vmem:[#allocation6 + $0x17d0] sm:$0xff]  ;;  %948 = vmatpush.msrb.mxu0 %v546_v2  ;;  %967 = vmatpush.msrb.mxu1 %v648_v3  ;;  %v834_v9 = vld [vmem:[#allocation6 + $0x17a0] sm:$0xff]  ;;  %v169_v3 = vld [vmem:[#allocation6 + $0x2d8] sm:$0xff] }
  0x38   :  { %v540_v6 = vld [vmem:[#allocation6 + $0xe70] sm:$0xff]  ;;  %988 = vmatpush.msrb.mxu2 %v738_v4  ;;  %1007 = vmatpush.msrb.mxu3 %v840_v5  ;;  %v534_v10 = vld [vmem:[#allocation6 + $0xe40] sm:$0xff]  ;;  %v361_v4 = vld [vmem:[#allocation6 + $0x8d8] sm:$0xff] }
  0x39   :  { %v732_v8 = vld [vmem:[#allocation6 + $0x1470] sm:$0xff]  ;;  %949 = vmatpush.msrb.mxu0 %v540_v6  ;;  %968 = vmatpush.msrb.mxu1 %v642_v7  ;;  %v726_v12 = vld [vmem:[#allocation6 + $0x1440] sm:$0xff] }
  0x3a   :  { %v636_v11 = vld [vmem:[#allocation6 + $0x1170] sm:$0xff]  ;;  %989 = vmatpush.msrb.mxu2 %v732_v8  ;;  %1008 = vmatpush.msrb.mxu3 %v834_v9  ;;  %v630_v15 = vld [vmem:[#allocation6 + $0x1140] sm:$0xff]  ;;  %v163_v8 = vld [vmem:[#allocation6 + $0x2a8] sm:$0xff] }
  0x3b   :  { %v828_v13 = vld [vmem:[#allocation6 + $0x1770] sm:$0xff]  ;;  %950 = vmatpush.msrb.mxu0 %v534_v10  ;;  %969 = vmatpush.msrb.mxu1 %v636_v11  ;;  %v822_v17 = vld [vmem:[#allocation6 + $0x1740] sm:$0xff]  ;;  %v265_v9 = vld [vmem:[#allocation6 + $0x5d8] sm:$0xff] }
  0x3c   :  { %v528_v14 = vld [vmem:[#allocation6 + $0xe10] sm:$0xff]  ;;  %990 = vmatpush.msrb.mxu2 %v726_v12  ;;  %1009 = vmatpush.msrb.mxu3 %v828_v13  ;;  %v522_v18 = vld [vmem:[#allocation6 + $0xde0] sm:$0xff]  ;;  %v355_v10 = vld [vmem:[#allocation6 + $0x8a8] sm:$0xff] }
  0x3d   :  { %v720_v16 = vld [vmem:[#allocation6 + $0x1410] sm:$0xff]  ;;  %951 = vmatpush.msrb.mxu0 %v528_v14  ;;  %970 = vmatpush.msrb.mxu1 %v630_v15  ;;  %v714_v20 = vld [vmem:[#allocation6 + $0x13e0] sm:$0xff]  ;;  %v457_v11 = vld [vmem:[#allocation6 + $0xbd8] sm:$0xff] }
  0x3e   :  { %v624_v19 = vld [vmem:[#allocation6 + $0x1110] sm:$0xff]  ;;  %991 = vmatpush.msrb.mxu2 %v720_v16  ;;  %1010 = vmatpush.msrb.mxu3 %v822_v17  ;;  %v618_v24 = vld [vmem:[#allocation6 + $0x10e0] sm:$0xff]  ;;  %v157_v12 = vld [vmem:[#allocation6 + $0x278] sm:$0xff] }
  0x3f   :  { %v816_v21 = vld [vmem:[#allocation6 + $0x1710] sm:$0xff]  ;;  %952 = vmatpush.msrb.mxu0 %v522_v18  ;;  %971 = vmatpush.msrb.mxu1 %v624_v19  ;;  %v810_v26 = vld [vmem:[#allocation6 + $0x16e0] sm:$0xff]  ;;  %v259_v13 = vld [vmem:[#allocation6 + $0x5a8] sm:$0xff] }
  0x40   :  { %v76_v22 = vld [vmem:[#allocation2] sm:$0xff]  ;;  %992 = vmatpush.msrb.mxu2 %v714_v20  ;;  %1011 = vmatpush.msrb.mxu3 %v816_v21  ;;  %v510_v27 = vld [vmem:[#allocation6 + $0xd80] sm:$0xff]  ;;  %v349_v14 = vld [vmem:[#allocation6 + $0x878] sm:$0xff] }
  0x41   :  { %v516_v23 = vld [vmem:[#allocation6 + $0xdb0] sm:$0xff]  ;;  %848 = vst [vmem:[#allocation1] ss:$4 sm:$0xff] %v76_v22  ;;  %972 = vmatpush.msrb.mxu1 %v618_v24  ;;  %v702_v29 = vld [vmem:[#allocation6 + $0x1380] sm:$0xff]  ;;  %v451_v15 = vld [vmem:[#allocation6 + $0xba8] sm:$0xff] }
  0x42   :  { %v708_v25 = vld [vmem:[#allocation6 + $0x13b0] sm:$0xff]  ;;  %953 = vmatpush.msrb.mxu0 %v516_v23  ;;  %1012 = vmatpush.msrb.mxu3 %v810_v26  ;;  %v606_v32 = vld [vmem:[#allocation6 + $0x1080] sm:$0xff]  ;;  %v2180_v16 = vld.sshfl [vmem:[#allocation1 + $0x30] sm:$0xff pattern:$0x73625140] }
  0x43   :  { %v612_v28 = vld [vmem:[#allocation6 + $0x10b0] sm:$0xff]  ;;  %993 = vmatpush.msrb.mxu2 %v708_v25  ;;  %v798_v34 = vld [vmem:[#allocation6 + $0x1680] sm:$0xff]  ;;  %v151_v17 = vld [vmem:[#allocation6 + $0x248] sm:$0xff] }
  0x44   :  { %v804_v30 = vld [vmem:[#allocation6 + $0x16b0] sm:$0xff]  ;;  %954 = vmatpush.msrb.mxu0 %v510_v27  ;;  %973 = vmatpush.msrb.mxu1 %v612_v28  ;;  %v498_v36 = vld [vmem:[#allocation6 + $0xd20] sm:$0xff]  ;;  %v253_v18 = vld [vmem:[#allocation6 + $0x578] sm:$0xff] }
  0x45   :  { %v504_v31 = vld [vmem:[#allocation6 + $0xd50] sm:$0xff]  ;;  %994 = vmatpush.msrb.mxu2 %v702_v29  ;;  %1013 = vmatpush.msrb.mxu3 %v804_v30  ;;  %v690_v38 = vld [vmem:[#allocation6 + $0x1320] sm:$0xff]  ;;  %v343_v19 = vld [vmem:[#allocation6 + $0x848] sm:$0xff] }
  0x46   :  { %v696_v33 = vld [vmem:[#allocation6 + $0x1350] sm:$0xff]  ;;  %955 = vmatpush.msrb.mxu0 %v504_v31  ;;  %974 = vmatpush.msrb.mxu1 %v606_v32  ;;  %v594_v41 = vld [vmem:[#allocation6 + $0x1020] sm:$0xff]  ;;  %v2182_v20 = vld.sshfl [vmem:[#allocation1 + $0x20] sm:$0xff pattern:$0x73625140] }
  0x47   :  { %v600_v37 = vld [vmem:[#allocation6 + $0x1050] sm:$0xff]  ;;  %995 = vmatpush.msrb.mxu2 %v696_v33  ;;  %1014 = vmatpush.msrb.mxu3 %v798_v34  ;;  %v786_v43 = vld [vmem:[#allocation6 + $0x1620] sm:$0xff]  ;;  %v445_v21 = vld [vmem:[#allocation6 + $0xb78] sm:$0xff] }
  0x48   :  { %v792_v39 = vld [vmem:[#allocation6 + $0x1650] sm:$0xff]  ;;  %956 = vmatpush.msrb.mxu0 %v498_v36  ;;  %975 = vmatpush.msrb.mxu1 %v600_v37  ;;  %v486_v44 = vld [vmem:[#allocation6 + $0xcc0] sm:$0xff]  ;;  %v2168_v60 = vld.sshfl [vmem:[#allocation1 + $0x10] sm:$0xff pattern:$0x73625140] }
  0x49   :  { %v492_v40 = vld [vmem:[#allocation6 + $0xcf0] sm:$0xff]  ;;  %996 = vmatpush.msrb.mxu2 %v690_v38  ;;  %1015 = vmatpush.msrb.mxu3 %v792_v39  ;;  %v678_v46 = vld [vmem:[#allocation6 + $0x12c0] sm:$0xff]  ;;  %v2170_v1 = vld.sshfl [vmem:[#allocation1] sm:$0xff pattern:$0x73625140] }
  0x4a   :  { %v684_v42 = vld [vmem:[#allocation6 + $0x12f0] sm:$0xff]  ;;  %957 = vmatpush.msrb.mxu0 %v492_v40  ;;  %976 = vmatpush.msrb.mxu1 %v594_v41  ;;  %v582_v49 = vld [vmem:[#allocation6 + $0xfc0] sm:$0xff]  ;;  %v145_v23 = vld [vmem:[#allocation6 + $0x218] sm:$0xff] }
  0x4b   :  { %v588_v45 = vld [vmem:[#allocation6 + $0xff0] sm:$0xff]  ;;  %997 = vmatpush.msrb.mxu2 %v684_v42  ;;  %1016 = vmatpush.msrb.mxu3 %v786_v43  ;;  %v774_v51 = vld [vmem:[#allocation6 + $0x15c0] sm:$0xff]  ;;  %v247_v24 = vld [vmem:[#allocation6 + $0x548] sm:$0xff] }
  0x4c   :  { %v780_v47 = vld [vmem:[#allocation6 + $0x15f0] sm:$0xff]  ;;  %958 = vmatpush.msrb.mxu0 %v486_v44  ;;  %977 = vmatpush.msrb.mxu1 %v588_v45  ;;  %v474_v52 = vld [vmem:[#allocation6 + $0xc60] sm:$0xff]  ;;  %v337_v25 = vld [vmem:[#allocation6 + $0x818] sm:$0xff] }
  0x4d   :  { %v480_v48 = vld [vmem:[#allocation6 + $0xc90] sm:$0xff]  ;;  %998 = vmatpush.msrb.mxu2 %v678_v46  ;;  %1017 = vmatpush.msrb.mxu3 %v780_v47  ;;  %v666_v54 = vld [vmem:[#allocation6 + $0x1260] sm:$0xff]  ;;  %v439_v26 = vld [vmem:[#allocation6 + $0xb48] sm:$0xff] }
  0x4e   :  { %v672_v50 = vld [vmem:[#allocation6 + $0x1290] sm:$0xff]  ;;  %959 = vmatpush.msrb.mxu0 %v480_v48  ;;  %978 = vmatpush.msrb.mxu1 %v582_v49  ;;  %v570_v57 = vld [vmem:[#allocation6 + $0xf60] sm:$0xff]  ;;  %v139_v28 = vld [vmem:[#allocation6 + $0x1e8] sm:$0xff] }
  0x4f   :  { %v576_v53 = vld [vmem:[#allocation6 + $0xf90] sm:$0xff]  ;;  %999 = vmatpush.msrb.mxu2 %v672_v50  ;;  %1018 = vmatpush.msrb.mxu3 %v774_v51  ;;  %v762_v59 = vld [vmem:[#allocation6 + $0x1560] sm:$0xff]  ;;  %v241_v29 = vld [vmem:[#allocation6 + $0x518] sm:$0xff] }
  0x50   :  { %v768_v55 = vld [vmem:[#allocation6 + $0x1590] sm:$0xff]  ;;  %960 = vmatpush.msrb.mxu0 %v474_v52  ;;  %979 = vmatpush.msrb.mxu1 %v576_v53  ;;  %v462_v61 = vld [vmem:[#allocation6 + $0xc00] sm:$0xff]  ;;  %v331_v30 = vld [vmem:[#allocation6 + $0x7e8] sm:$0xff] }
  0x51   :  { %v468_v56 = vld [vmem:[#allocation6 + $0xc30] sm:$0xff]  ;;  %1000 = vmatpush.msrb.mxu2 %v666_v54  ;;  %1019 = vmatpush.msrb.mxu3 %v768_v55  ;;  %v654_v63 = vld [vmem:[#allocation6 + $0x1200] sm:$0xff]  ;;  %v433_v31 = vld [vmem:[#allocation6 + $0xb18] sm:$0xff] }
  0x52   :  { %v660_v58 = vld [vmem:[#allocation6 + $0x1230] sm:$0xff]  ;;  %961 = vmatpush.msrb.mxu0 %v468_v56  ;;  %980 = vmatpush.msrb.mxu1 %v570_v57  ;;  %v2173_v2 = vld.sshfl [vmem:[#allocation1 + $0x18] sm:$0xff pattern:$0x73625140]  ;;  %v133_v32 = vld [vmem:[#allocation6 + $0x1b8] sm:$0xff] }
  0x53   :  { %v564_v62 = vld [vmem:[#allocation6 + $0xf30] sm:$0xff]  ;;  %1001 = vmatpush.msrb.mxu2 %v660_v58  ;;  %1020 = vmatpush.msrb.mxu3 %v762_v59  ;;  %v558_v5 = vld [vmem:[#allocation6 + $0xf00] sm:$0xff]  ;;  %v235_v33 = vld [vmem:[#allocation6 + $0x4e8] sm:$0xff] }
  0x54   :  { %v756_v0 = vld [vmem:[#allocation6 + $0x1530] sm:$0xff]  ;;  %923 = vmatmul.f32.vlgmr.msra.gmra.mxu2 %v2168_v60  ;;  %962 = vmatpush.msrb.mxu0 %v462_v61  ;;  %v750_v6 = vld [vmem:[#allocation6 + $0x1500] sm:$0xff]  ;;  %v325_v34 = vld [vmem:[#allocation6 + $0x7b8] sm:$0xff] }
  0x55   :  { %981 = vmatpush.msrb.mxu1 %v564_v62  ;;  %1002 = vmatpush.msrb.mxu2 %v654_v63  ;;  %v2176_v7 = vld.sshfl [vmem:[#allocation1 + $0x8] sm:$0xff pattern:$0x73625140]  ;;  %v2185_v22 = vld.sshfl [vmem:[#allocation1 + $0x38] sm:$0xff pattern:$0x73625140] }
  0x56   :  { %1021 = vmatpush.msrb.mxu3 %v756_v0  ;;  %883 = vmatmul.f32.vlgmr.msra.gmra.mxu0 %v2170_v1  ;;  %v2188_v27 = vld.sshfl [vmem:[#allocation1 + $0x28] sm:$0xff pattern:$0x73625140]  ;;  %v127_v36 = vld [vmem:[#allocation6 + $0x188] sm:$0xff]  ;;  %v229_v37 = vld [vmem:[#allocation6 + $0x4b8] sm:$0xff] }
  0x57   :  { %943 = vmatmul.f32.vlgmr.msra.gmra.mxu3 %v2173_v2  ;;  %1027 = vmatpush.msra.mxu0 %v169_v3  ;;  %v319_v38 = vld [vmem:[#allocation6 + $0x788] sm:$0xff]  ;;  %v421_v39 = vld [vmem:[#allocation6 + $0xab8] sm:$0xff] }
  0x58   :  { %1067 = vmatpush.msra.mxu2 %v361_v4  ;;  %982 = vmatpush.msrb.mxu1 %v558_v5  ;;  %v121_v40 = vld [vmem:[#allocation6 + $0x158] sm:$0xff]  ;;  %v223_v41 = vld [vmem:[#allocation6 + $0x488] sm:$0xff] }
  0x59   :  { %1022 = vmatpush.msrb.mxu3 %v750_v6  ;;  %903 = vmatmul.f32.vlgmr.msra.gmra.mxu1 %v2176_v7  ;;  %v313_v42 = vld [vmem:[#allocation6 + $0x758] sm:$0xff]  ;;  %v415_v43 = vld [vmem:[#allocation6 + $0xa88] sm:$0xff] }
  0x5a   :  { %1028 = vmatpush.msra.mxu0 %v163_v8  ;;  %1047 = vmatpush.msra.mxu1 %v265_v9  ;;  %v115_v44 = vld [vmem:[#allocation6 + $0x128] sm:$0xff]  ;;  %v217_v45 = vld [vmem:[#allocation6 + $0x458] sm:$0xff] }
  0x5b   :  { %1068 = vmatpush.msra.mxu2 %v355_v10  ;;  %1087 = vmatpush.msra.mxu3 %v457_v11  ;;  %v307_v46 = vld [vmem:[#allocation6 + $0x728] sm:$0xff]  ;;  %v409_v47 = vld [vmem:[#allocation6 + $0xa58] sm:$0xff] }
  0x5c   :  { %1029 = vmatpush.msra.mxu0 %v157_v12  ;;  %1048 = vmatpush.msra.mxu1 %v259_v13  ;;  %v109_v48 = vld [vmem:[#allocation6 + $0xf8] sm:$0xff]  ;;  %v211_v49 = vld [vmem:[#allocation6 + $0x428] sm:$0xff] }
  0x5d   :  { %1069 = vmatpush.msra.mxu2 %v349_v14  ;;  %1088 = vmatpush.msra.mxu3 %v451_v15  ;;  %v301_v50 = vld [vmem:[#allocation6 + $0x6f8] sm:$0xff]  ;;  %v403_v51 = vld [vmem:[#allocation6 + $0xa28] sm:$0xff] }
  0x5e   :  { %1003 = vmatmul.f32.vlgmr.msrb.gmra.mxu2 %v2180_v16  ;;  %1030 = vmatpush.msra.mxu0 %v151_v17  ;;  %v103_v52 = vld [vmem:[#allocation6 + $0xc8] sm:$0xff]  ;;  %v205_v53 = vld [vmem:[#allocation6 + $0x3f8] sm:$0xff] }
  0x5f   :  { %1049 = vmatpush.msra.mxu1 %v253_v18  ;;  %1070 = vmatpush.msra.mxu2 %v343_v19  ;;  %v295_v54 = vld [vmem:[#allocation6 + $0x6c8] sm:$0xff]  ;;  %v397_v55 = vld [vmem:[#allocation6 + $0x9f8] sm:$0xff] }
  0x60   :  { %1089 = vmatpush.msra.mxu3 %v445_v21  ;;  %963 = vmatmul.f32.vlgmr.msrb.gmra.mxu0 %v2182_v20  ;;  %v97_v56 = vld [vmem:[#allocation6 + $0x98] sm:$0xff]  ;;  %v199_v57 = vld [vmem:[#allocation6 + $0x3c8] sm:$0xff] }
  0x61   :  { %1023 = vmatmul.f32.vlgmr.msrb.gmra.mxu3 %v2185_v22  ;;  %1031 = vmatpush.msra.mxu0 %v145_v23  ;;  %v289_v58 = vld [vmem:[#allocation6 + $0x698] sm:$0xff]  ;;  %v391_v59 = vld [vmem:[#allocation6 + $0x9c8] sm:$0xff] }
  0x62   :  { %1050 = vmatpush.msra.mxu1 %v247_v24  ;;  %1071 = vmatpush.msra.mxu2 %v337_v25  ;;  %v91_v61 = vld [vmem:[#allocation6 + $0x68] sm:$0xff]  ;;  %v193_v62 = vld [vmem:[#allocation6 + $0x398] sm:$0xff] }
  0x63   :  { %1090 = vmatpush.msra.mxu3 %v439_v26  ;;  %983 = vmatmul.f32.vlgmr.msrb.gmra.mxu1 %v2188_v27  ;;  %v283_v63 = vld [vmem:[#allocation6 + $0x668] sm:$0xff]  ;;  %v385_v0 = vld [vmem:[#allocation6 + $0x998] sm:$0xff] }
  0x64   :  { %1032 = vmatpush.msra.mxu0 %v139_v28  ;;  %1051 = vmatpush.msra.mxu1 %v241_v29  ;;  %v85_v3 = vld [vmem:[#allocation6 + $0x38] sm:$0xff]  ;;  %v187_v4 = vld [vmem:[#allocation6 + $0x368] sm:$0xff] }
  0x65   :  { %1072 = vmatpush.msra.mxu2 %v331_v30  ;;  %1091 = vmatpush.msra.mxu3 %v433_v31  ;;  %v277_v5 = vld [vmem:[#allocation6 + $0x638] sm:$0xff]  ;;  %v379_v6 = vld [vmem:[#allocation6 + $0x968] sm:$0xff] }
  0x66   :  { %1033 = vmatpush.msra.mxu0 %v133_v32  ;;  %1052 = vmatpush.msra.mxu1 %v235_v33  ;;  %v79_v8 = vld [vmem:[#allocation6 + $0x8] sm:$0xff]  ;;  %v181_v9 = vld [vmem:[#allocation6 + $0x338] sm:$0xff] }
  0x67   :  { %1073 = vmatpush.msra.mxu2 %v325_v34  ;;  %1092 = vmatpush.msra.mxu3 %v427_v35  ;;  %v271_v10 = vld [vmem:[#allocation6 + $0x608] sm:$0xff]  ;;  %v373_v11 = vld [vmem:[#allocation6 + $0x938] sm:$0xff] }
  0x68   :  { %1034 = vmatpush.msra.mxu0 %v127_v36  ;;  %1053 = vmatpush.msra.mxu1 %v229_v37  ;;  %v553_v12 = vld [vmem:[#allocation6 + $0xed8] sm:$0xff]  ;;  %v175_v14 = vld [vmem:[#allocation6 + $0x308] sm:$0xff] }
  0x69   :  { %1074 = vmatpush.msra.mxu2 %v319_v38  ;;  %1093 = vmatpush.msra.mxu3 %v421_v39  ;;  %v745_v13 = vld [vmem:[#allocation6 + $0x14d8] sm:$0xff]  ;;  %v367_v15 = vld [vmem:[#allocation6 + $0x908] sm:$0xff] }
  0x6a   :  { %1035 = vmatpush.msra.mxu0 %v121_v40  ;;  %1054 = vmatpush.msra.mxu1 %v223_v41  ;;  %v547_v17 = vld [vmem:[#allocation6 + $0xea8] sm:$0xff]  ;;  %v649_v18 = vld [vmem:[#allocation6 + $0x11d8] sm:$0xff] }
  0x6b   :  { %1075 = vmatpush.msra.mxu2 %v313_v42  ;;  %1094 = vmatpush.msra.mxu3 %v415_v43  ;;  %v739_v19 = vld [vmem:[#allocation6 + $0x14a8] sm:$0xff]  ;;  %v841_v21 = vld [vmem:[#allocation6 + $0x17d8] sm:$0xff] }
  0x6c   :  { %1036 = vmatpush.msra.mxu0 %v115_v44  ;;  %1055 = vmatpush.msra.mxu1 %v217_v45  ;;  %v541_v23 = vld [vmem:[#allocation6 + $0xe78] sm:$0xff]  ;;  %v643_v24 = vld [vmem:[#allocation6 + $0x11a8] sm:$0xff] }
  0x6d   :  { %1076 = vmatpush.msra.mxu2 %v307_v46  ;;  %1095 = vmatpush.msra.mxu3 %v409_v47  ;;  %v733_v25 = vld [vmem:[#allocation6 + $0x1478] sm:$0xff]  ;;  %v835_v26 = vld [vmem:[#allocation6 + $0x17a8] sm:$0xff] }
  0x6e   :  { %1037 = vmatpush.msra.mxu0 %v109_v48  ;;  %1056 = vmatpush.msra.mxu1 %v211_v49  ;;  %v535_v28 = vld [vmem:[#allocation6 + $0xe48] sm:$0xff]  ;;  %v637_v29 = vld [vmem:[#allocation6 + $0x1178] sm:$0xff] }
  0x6f   :  { %1077 = vmatpush.msra.mxu2 %v301_v50  ;;  %1096 = vmatpush.msra.mxu3 %v403_v51  ;;  %v727_v30 = vld [vmem:[#allocation6 + $0x1448] sm:$0xff]  ;;  %v829_v31 = vld [vmem:[#allocation6 + $0x1778] sm:$0xff] }
  0x70   :  { %1038 = vmatpush.msra.mxu0 %v103_v52  ;;  %1057 = vmatpush.msra.mxu1 %v205_v53  ;;  %v529_v32 = vld [vmem:[#allocation6 + $0xe18] sm:$0xff]  ;;  %v631_v33 = vld [vmem:[#allocation6 + $0x1148] sm:$0xff] }
  0x71   :  { %1078 = vmatpush.msra.mxu2 %v295_v54  ;;  %1097 = vmatpush.msra.mxu3 %v397_v55  ;;  %v721_v34 = vld [vmem:[#allocation6 + $0x1418] sm:$0xff]  ;;  %v823_v35 = vld [vmem:[#allocation6 + $0x1748] sm:$0xff] }
  0x72   :  { %1039 = vmatpush.msra.mxu0 %v97_v56  ;;  %1058 = vmatpush.msra.mxu1 %v199_v57  ;;  %v523_v36 = vld [vmem:[#allocation6 + $0xde8] sm:$0xff]  ;;  %v625_v37 = vld [vmem:[#allocation6 + $0x1118] sm:$0xff] }
  0x73   :  { %1079 = vmatpush.msra.mxu2 %v289_v58  ;;  %1098 = vmatpush.msra.mxu3 %v391_v59  ;;  %v715_v38 = vld [vmem:[#allocation6 + $0x13e8] sm:$0xff]  ;;  %v817_v39 = vld [vmem:[#allocation6 + $0x1718] sm:$0xff] }
  0x74   :  { %1040 = vmatpush.msra.mxu0 %v91_v61  ;;  %1059 = vmatpush.msra.mxu1 %v193_v62  ;;  %v517_v40 = vld [vmem:[#allocation6 + $0xdb8] sm:$0xff]  ;;  %v619_v41 = vld [vmem:[#allocation6 + $0x10e8] sm:$0xff] }
  0x75   :  { %1080 = vmatpush.msra.mxu2 %v283_v63  ;;  %1099 = vmatpush.msra.mxu3 %v385_v0  ;;  %v709_v42 = vld [vmem:[#allocation6 + $0x13b8] sm:$0xff]  ;;  %v811_v43 = vld [vmem:[#allocation6 + $0x16e8] sm:$0xff] }
  0x76   :  { %1041 = vmatpush.msra.mxu0 %v85_v3  ;;  %1060 = vmatpush.msra.mxu1 %v187_v4  ;;  %v511_v44 = vld [vmem:[#allocation6 + $0xd88] sm:$0xff]  ;;  %v613_v45 = vld [vmem:[#allocation6 + $0x10b8] sm:$0xff] }
  0x77   :  { %1081 = vmatpush.msra.mxu2 %v277_v5  ;;  %1100 = vmatpush.msra.mxu3 %v379_v6  ;;  %v703_v46 = vld [vmem:[#allocation6 + $0x1388] sm:$0xff]  ;;  %v805_v47 = vld [vmem:[#allocation6 + $0x16b8] sm:$0xff] }
  0x78   :  { %1042 = vmatpush.msra.mxu0 %v79_v8  ;;  %1061 = vmatpush.msra.mxu1 %v181_v9  ;;  %v505_v48 = vld [vmem:[#allocation6 + $0xd58] sm:$0xff]  ;;  %v607_v49 = vld [vmem:[#allocation6 + $0x1088] sm:$0xff] }
  0x79   :  { %1082 = vmatpush.msra.mxu2 %v271_v10  ;;  %1101 = vmatpush.msra.mxu3 %v373_v11  ;;  %v697_v50 = vld [vmem:[#allocation6 + $0x1358] sm:$0xff]  ;;  %v799_v51 = vld [vmem:[#allocation6 + $0x1688] sm:$0xff] }
  0x7a   :  { %1107 = vmatpush.msrb.mxu0 %v553_v12  ;;  %1062 = vmatpush.msra.mxu1 %v175_v14  ;;  %v499_v52 = vld [vmem:[#allocation6 + $0xd28] sm:$0xff]  ;;  %v601_v53 = vld [vmem:[#allocation6 + $0x1058] sm:$0xff] }
  0x7b   :  { %1147 = vmatpush.msrb.mxu2 %v745_v13  ;;  %1102 = vmatpush.msra.mxu3 %v367_v15  ;;  %v691_v54 = vld [vmem:[#allocation6 + $0x1328] sm:$0xff]  ;;  %v793_v55 = vld [vmem:[#allocation6 + $0x1658] sm:$0xff] }
  0x7c   :  { %1108 = vmatpush.msrb.mxu0 %v547_v17  ;;  %1127 = vmatpush.msrb.mxu1 %v649_v18  ;;  %v493_v56 = vld [vmem:[#allocation6 + $0xcf8] sm:$0xff]  ;;  %v595_v57 = vld [vmem:[#allocation6 + $0x1028] sm:$0xff] }
  0x7d   :  { %1148 = vmatpush.msrb.mxu2 %v739_v19  ;;  %1167 = vmatpush.msrb.mxu3 %v841_v21  ;;  %v685_v58 = vld [vmem:[#allocation6 + $0x12f8] sm:$0xff]  ;;  %v787_v59 = vld [vmem:[#allocation6 + $0x1628] sm:$0xff] }
  0x7e   :  { %1109 = vmatpush.msrb.mxu0 %v541_v23  ;;  %1128 = vmatpush.msrb.mxu1 %v643_v24  ;;  %v487_v61 = vld [vmem:[#allocation6 + $0xcc8] sm:$0xff]  ;;  %v589_v62 = vld [vmem:[#allocation6 + $0xff8] sm:$0xff]  ;;  %v266_v24 = vld [vmem:[#allocation6 + $0x5e0] sm:$0xff] }
  0x7f   :  { %1149 = vmatpush.msrb.mxu2 %v733_v25  ;;  %1168 = vmatpush.msrb.mxu3 %v835_v26  ;;  %v679_v63 = vld [vmem:[#allocation6 + $0x12c8] sm:$0xff]  ;;  %v781_v0 = vld [vmem:[#allocation6 + $0x15f8] sm:$0xff]  ;;  %v356_v25 = vld [vmem:[#allocation6 + $0x8b0] sm:$0xff] }
  0x80   :  { %1110 = vmatpush.msrb.mxu0 %v535_v28  ;;  %1129 = vmatpush.msrb.mxu1 %v637_v29  ;;  %v481_v3 = vld [vmem:[#allocation6 + $0xc98] sm:$0xff]  ;;  %v583_v4 = vld [vmem:[#allocation6 + $0xfc8] sm:$0xff]  ;;  %v458_v26 = vld [vmem:[#allocation6 + $0xbe0] sm:$0xff] }
  0x81   :  { %1150 = vmatpush.msrb.mxu2 %v727_v30  ;;  %1169 = vmatpush.msrb.mxu3 %v829_v31  ;;  %v673_v5 = vld [vmem:[#allocation6 + $0x1298] sm:$0xff]  ;;  %v775_v6 = vld [vmem:[#allocation6 + $0x15c8] sm:$0xff]  ;;  %v158_v28 = vld [vmem:[#allocation6 + $0x280] sm:$0xff] }
  0x82   :  { %1111 = vmatpush.msrb.mxu0 %v529_v32  ;;  %1130 = vmatpush.msrb.mxu1 %v631_v33  ;;  %v475_v8 = vld [vmem:[#allocation6 + $0xc68] sm:$0xff]  ;;  %v577_v9 = vld [vmem:[#allocation6 + $0xf98] sm:$0xff]  ;;  %v260_v29 = vld [vmem:[#allocation6 + $0x5b0] sm:$0xff] }
  0x83   :  { %1151 = vmatpush.msrb.mxu2 %v721_v34  ;;  %1170 = vmatpush.msrb.mxu3 %v823_v35  ;;  %v667_v10 = vld [vmem:[#allocation6 + $0x1268] sm:$0xff]  ;;  %v769_v11 = vld [vmem:[#allocation6 + $0x1598] sm:$0xff]  ;;  %v350_v30 = vld [vmem:[#allocation6 + $0x880] sm:$0xff] }
  0x84   :  { %1112 = vmatpush.msrb.mxu0 %v523_v36  ;;  %1131 = vmatpush.msrb.mxu1 %v625_v37  ;;  %v469_v12 = vld [vmem:[#allocation6 + $0xc38] sm:$0xff]  ;;  %v571_v13 = vld [vmem:[#allocation6 + $0xf68] sm:$0xff]  ;;  %v452_v31 = vld [vmem:[#allocation6 + $0xbb0] sm:$0xff] }
  0x85   :  { %1152 = vmatpush.msrb.mxu2 %v715_v38  ;;  %1171 = vmatpush.msrb.mxu3 %v817_v39  ;;  %v661_v14 = vld [vmem:[#allocation6 + $0x1238] sm:$0xff]  ;;  %v763_v15 = vld [vmem:[#allocation6 + $0x1568] sm:$0xff]  ;;  %v254_v32 = vld [vmem:[#allocation6 + $0x580] sm:$0xff] }
  0x86   :  { %1113 = vmatpush.msrb.mxu0 %v517_v40  ;;  %1132 = vmatpush.msrb.mxu1 %v619_v41  ;;  %v565_v17 = vld [vmem:[#allocation6 + $0xf38] sm:$0xff]  ;;  %v655_v18 = vld [vmem:[#allocation6 + $0x1208] sm:$0xff]  ;;  %v344_v33 = vld [vmem:[#allocation6 + $0x850] sm:$0xff] }
  0x87   :  { %1153 = vmatpush.msrb.mxu2 %v709_v42  ;;  %1172 = vmatpush.msrb.mxu3 %v811_v43  ;;  %v757_v19 = vld [vmem:[#allocation6 + $0x1538] sm:$0xff]  ;;  %v559_v21 = vld [vmem:[#allocation6 + $0xf08] sm:$0xff]  ;;  %v446_v34 = vld [vmem:[#allocation6 + $0xb80] sm:$0xff] }
  0x88   :  { %1114 = vmatpush.msrb.mxu0 %v511_v44  ;;  %1133 = vmatpush.msrb.mxu1 %v613_v45  ;;  %v751_v23 = vld [vmem:[#allocation6 + $0x1508] sm:$0xff]  ;;  %v338_v35 = vld [vmem:[#allocation6 + $0x820] sm:$0xff]  ;;  %v440_v36 = vld [vmem:[#allocation6 + $0xb50] sm:$0xff] }
  0x89   :  { %1154 = vmatpush.msrb.mxu2 %v703_v46  ;;  %1173 = vmatpush.msrb.mxu3 %v805_v47  ;;  %v140_v37 = vld [vmem:[#allocation6 + $0x1f0] sm:$0xff]  ;;  %v242_v38 = vld [vmem:[#allocation6 + $0x520] sm:$0xff] }
  0x8a   :  { %1115 = vmatpush.msrb.mxu0 %v505_v48  ;;  %1134 = vmatpush.msrb.mxu1 %v607_v49  ;;  %v434_v39 = vld [vmem:[#allocation6 + $0xb20] sm:$0xff]  ;;  %v236_v41 = vld [vmem:[#allocation6 + $0x4f0] sm:$0xff] }
  0x8b   :  { %1155 = vmatpush.msrb.mxu2 %v697_v50  ;;  %1174 = vmatpush.msrb.mxu3 %v799_v51  ;;  %v134_v40 = vld [vmem:[#allocation6 + $0x1c0] sm:$0xff]  ;;  %v428_v43 = vld [vmem:[#allocation6 + $0xaf0] sm:$0xff] }
  0x8c   :  { %1116 = vmatpush.msrb.mxu0 %v499_v52  ;;  %1135 = vmatpush.msrb.mxu1 %v601_v53  ;;  %v326_v42 = vld [vmem:[#allocation6 + $0x7c0] sm:$0xff]  ;;  %v128_v44 = vld [vmem:[#allocation6 + $0x190] sm:$0xff] }
  0x8d   :  { %1156 = vmatpush.msrb.mxu2 %v691_v54  ;;  %1175 = vmatpush.msrb.mxu3 %v793_v55  ;;  %v230_v45 = vld [vmem:[#allocation6 + $0x4c0] sm:$0xff]  ;;  %v320_v46 = vld [vmem:[#allocation6 + $0x790] sm:$0xff] }
  0x8e   :  { %1117 = vmatpush.msrb.mxu0 %v493_v56  ;;  %1136 = vmatpush.msrb.mxu1 %v595_v57  ;;  %v422_v47 = vld [vmem:[#allocation6 + $0xac0] sm:$0xff]  ;;  %v224_v49 = vld [vmem:[#allocation6 + $0x490] sm:$0xff] }
  0x8f   :  { %1157 = vmatpush.msrb.mxu2 %v685_v58  ;;  %1176 = vmatpush.msrb.mxu3 %v787_v59  ;;  %v122_v48 = vld [vmem:[#allocation6 + $0x160] sm:$0xff]  ;;  %v416_v51 = vld [vmem:[#allocation6 + $0xa90] sm:$0xff] }
  0x90   :  { %1118 = vmatpush.msrb.mxu0 %v487_v61  ;;  %1137 = vmatpush.msrb.mxu1 %v589_v62  ;;  %v314_v50 = vld [vmem:[#allocation6 + $0x760] sm:$0xff]  ;;  %v116_v52 = vld [vmem:[#allocation6 + $0x130] sm:$0xff] }
  0x91   :  { %1158 = vmatpush.msrb.mxu2 %v679_v63  ;;  %1177 = vmatpush.msrb.mxu3 %v781_v0  ;;  %v218_v53 = vld [vmem:[#allocation6 + $0x460] sm:$0xff]  ;;  %v308_v54 = vld [vmem:[#allocation6 + $0x730] sm:$0xff] }
  0x92   :  { %1083 = vmatmul.f32.vlgmr.msra.gmra.mxu2 %v2168_v60  ;;  %1119 = vmatpush.msrb.mxu0 %v481_v3  ;;  %v463_v60 = vld [vmem:[#allocation6 + $0xc08] sm:$0xff]  ;;  %v410_v55 = vld [vmem:[#allocation6 + $0xa60] sm:$0xff]  ;;  %v212_v57 = vld [vmem:[#allocation6 + $0x430] sm:$0xff] }
  0x93   :  { %1138 = vmatpush.msrb.mxu1 %v583_v4  ;;  %1159 = vmatpush.msrb.mxu2 %v673_v5  ;;  %v110_v56 = vld [vmem:[#allocation6 + $0x100] sm:$0xff]  ;;  %v404_v59 = vld [vmem:[#allocation6 + $0xa30] sm:$0xff] }
  0x94   :  { %1178 = vmatpush.msrb.mxu3 %v775_v6  ;;  %1043 = vmatmul.f32.vlgmr.msra.gmra.mxu0 %v2170_v1  ;;  %v170_v1 = vld [vmem:[#allocation6 + $0x2e0] sm:$0xff]  ;;  %v104_v61 = vld [vmem:[#allocation6 + $0xd0] sm:$0xff] }
  0x95   :  { %1103 = vmatmul.f32.vlgmr.msra.gmra.mxu3 %v2173_v2  ;;  %1120 = vmatpush.msrb.mxu0 %v475_v8  ;;  %v362_v2 = vld [vmem:[#allocation6 + $0x8e0] sm:$0xff]  ;;  %v296_v63 = vld [vmem:[#allocation6 + $0x6d0] sm:$0xff] }
  0x96   :  { %1139 = vmatpush.msrb.mxu1 %v577_v9  ;;  %1160 = vmatpush.msrb.mxu2 %v667_v10  ;;  %v302_v58 = vld [vmem:[#allocation6 + $0x700] sm:$0xff]  ;;  %v200_v4 = vld [vmem:[#allocation6 + $0x3d0] sm:$0xff] }
  0x97   :  { %1179 = vmatpush.msrb.mxu3 %v769_v11  ;;  %1063 = vmatmul.f32.vlgmr.msra.gmra.mxu1 %v2176_v7  ;;  %v164_v7 = vld [vmem:[#allocation6 + $0x2b0] sm:$0xff]  ;;  %v206_v62 = vld [vmem:[#allocation6 + $0x400] sm:$0xff] }
  0x98   :  { %1121 = vmatpush.msrb.mxu0 %v469_v12  ;;  %1140 = vmatpush.msrb.mxu1 %v571_v13  ;;  %v398_v0 = vld [vmem:[#allocation6 + $0xa00] sm:$0xff]  ;;  %v392_v6 = vld [vmem:[#allocation6 + $0x9d0] sm:$0xff] }
  0x99   :  { %1161 = vmatpush.msrb.mxu2 %v661_v14  ;;  %1180 = vmatpush.msrb.mxu3 %v763_v15  ;;  %v98_v3 = vld [vmem:[#allocation6 + $0xa0] sm:$0xff]  ;;  %v92_v8 = vld [vmem:[#allocation6 + $0x70] sm:$0xff] }
  0x9a   :  { %1122 = vmatpush.msrb.mxu0 %v463_v60  ;;  %1141 = vmatpush.msrb.mxu1 %v565_v17  ;;  %v290_v5 = vld [vmem:[#allocation6 + $0x6a0] sm:$0xff]  ;;  %v284_v10 = vld [vmem:[#allocation6 + $0x670] sm:$0xff] }
  0x9b   :  { %1162 = vmatpush.msrb.mxu2 %v655_v18  ;;  %1181 = vmatpush.msrb.mxu3 %v757_v19  ;;  %v194_v9 = vld [vmem:[#allocation6 + $0x3a0] sm:$0xff]  ;;  %v188_v13 = vld [vmem:[#allocation6 + $0x370] sm:$0xff] }
  0x9c   :  { %1163 = vmatmul.f32.vlgmr.msrb.gmra.mxu2 %v2180_v16  ;;  %1187 = vmatpush.msra.mxu0 %v170_v1  ;;  %v152_v16 = vld [vmem:[#allocation6 + $0x250] sm:$0xff]  ;;  %v386_v11 = vld [vmem:[#allocation6 + $0x9a0] sm:$0xff] }
  0x9d   :  { %1227 = vmatpush.msra.mxu2 %v362_v2  ;;  %1142 = vmatpush.msrb.mxu1 %v559_v21  ;;  %v86_v12 = vld [vmem:[#allocation6 + $0x40] sm:$0xff]  ;;  %v380_v15 = vld [vmem:[#allocation6 + $0x970] sm:$0xff] }
  0x9e   :  { %1182 = vmatpush.msrb.mxu3 %v751_v23  ;;  %1123 = vmatmul.f32.vlgmr.msrb.gmra.mxu0 %v2182_v20  ;;  %v146_v20 = vld [vmem:[#allocation6 + $0x220] sm:$0xff]  ;;  %v80_v60 = vld [vmem:[#allocation6 + $0x10] sm:$0xff] }
  0x9f   :  { %1183 = vmatmul.f32.vlgmr.msrb.gmra.mxu3 %v2185_v22  ;;  %1188 = vmatpush.msra.mxu0 %v164_v7  ;;  %v248_v22 = vld [vmem:[#allocation6 + $0x550] sm:$0xff]  ;;  %v278_v14 = vld [vmem:[#allocation6 + $0x640] sm:$0xff] }
  0xa0   :  { %1207 = vmatpush.msra.mxu1 %v266_v24  ;;  %1228 = vmatpush.msra.mxu2 %v356_v25  ;;  %v182_v17 = vld [vmem:[#allocation6 + $0x340] sm:$0xff]  ;;  %v272_v18 = vld [vmem:[#allocation6 + $0x610] sm:$0xff] }
  0xa1   :  { %1247 = vmatpush.msra.mxu3 %v458_v26  ;;  %1143 = vmatmul.f32.vlgmr.msrb.gmra.mxu1 %v2188_v27  ;;  %v332_v27 = vld [vmem:[#allocation6 + $0x7f0] sm:$0xff]  ;;  %v374_v19 = vld [vmem:[#allocation6 + $0x940] sm:$0xff] }
  0xa2   :  { %1189 = vmatpush.msra.mxu0 %v158_v28  ;;  %1208 = vmatpush.msra.mxu1 %v260_v29  ;;  %v554_v1 = vld [vmem:[#allocation6 + $0xee0] sm:$0xff]  ;;  %v176_v21 = vld [vmem:[#allocation6 + $0x310] sm:$0xff] }
  0xa3   :  { %1229 = vmatpush.msra.mxu2 %v350_v30  ;;  %1248 = vmatpush.msra.mxu3 %v452_v31  ;;  %v746_v2 = vld [vmem:[#allocation6 + $0x14e0] sm:$0xff]  ;;  %v368_v23 = vld [vmem:[#allocation6 + $0x910] sm:$0xff] }
  0xa4   :  { %1190 = vmatpush.msra.mxu0 %v152_v16  ;;  %1209 = vmatpush.msra.mxu1 %v254_v32  ;;  %v548_v7 = vld [vmem:[#allocation6 + $0xeb0] sm:$0xff]  ;;  %v650_v24 = vld [vmem:[#allocation6 + $0x11e0] sm:$0xff] }
  0xa5   :  { %1230 = vmatpush.msra.mxu2 %v344_v33  ;;  %1249 = vmatpush.msra.mxu3 %v446_v34  ;;  %v740_v25 = vld [vmem:[#allocation6 + $0x14b0] sm:$0xff]  ;;  %v842_v26 = vld [vmem:[#allocation6 + $0x17e0] sm:$0xff] }
  0xa6   :  { %1191 = vmatpush.msra.mxu0 %v146_v20  ;;  %1210 = vmatpush.msra.mxu1 %v248_v22  ;;  %v542_v28 = vld [vmem:[#allocation6 + $0xe80] sm:$0xff]  ;;  %v644_v29 = vld [vmem:[#allocation6 + $0x11b0] sm:$0xff] }
  0xa7   :  { %1231 = vmatpush.msra.mxu2 %v338_v35  ;;  %1250 = vmatpush.msra.mxu3 %v440_v36  ;;  %v734_v30 = vld [vmem:[#allocation6 + $0x1480] sm:$0xff]  ;;  %v836_v31 = vld [vmem:[#allocation6 + $0x17b0] sm:$0xff] }
  0xa8   :  { %1192 = vmatpush.msra.mxu0 %v140_v37  ;;  %1211 = vmatpush.msra.mxu1 %v242_v38  ;;  %v536_v16 = vld [vmem:[#allocation6 + $0xe50] sm:$0xff]  ;;  %v638_v32 = vld [vmem:[#allocation6 + $0x1180] sm:$0xff] }
  0xa9   :  { %1232 = vmatpush.msra.mxu2 %v332_v27  ;;  %1251 = vmatpush.msra.mxu3 %v434_v39  ;;  %v728_v33 = vld [vmem:[#allocation6 + $0x1450] sm:$0xff]  ;;  %v830_v34 = vld [vmem:[#allocation6 + $0x1780] sm:$0xff] }
  0xaa   :  { %1193 = vmatpush.msra.mxu0 %v134_v40  ;;  %1212 = vmatpush.msra.mxu1 %v236_v41  ;;  %v530_v20 = vld [vmem:[#allocation6 + $0xe20] sm:$0xff]  ;;  %v632_v22 = vld [vmem:[#allocation6 + $0x1150] sm:$0xff] }
  0xab   :  { %1233 = vmatpush.msra.mxu2 %v326_v42  ;;  %1252 = vmatpush.msra.mxu3 %v428_v43  ;;  %v722_v35 = vld [vmem:[#allocation6 + $0x1420] sm:$0xff]  ;;  %v824_v36 = vld [vmem:[#allocation6 + $0x1750] sm:$0xff] }
  0xac   :  { %1194 = vmatpush.msra.mxu0 %v128_v44  ;;  %1213 = vmatpush.msra.mxu1 %v230_v45  ;;  %v524_v37 = vld [vmem:[#allocation6 + $0xdf0] sm:$0xff]  ;;  %v626_v38 = vld [vmem:[#allocation6 + $0x1120] sm:$0xff] }
  0xad   :  { %1234 = vmatpush.msra.mxu2 %v320_v46  ;;  %1253 = vmatpush.msra.mxu3 %v422_v47  ;;  %v716_v27 = vld [vmem:[#allocation6 + $0x13f0] sm:$0xff]  ;;  %v818_v39 = vld [vmem:[#allocation6 + $0x1720] sm:$0xff] }
  0xae   :  { %1195 = vmatpush.msra.mxu0 %v122_v48  ;;  %1214 = vmatpush.msra.mxu1 %v224_v49  ;;  %v518_v40 = vld [vmem:[#allocation6 + $0xdc0] sm:$0xff]  ;;  %v620_v41 = vld [vmem:[#allocation6 + $0x10f0] sm:$0xff] }
  0xaf   :  { %1235 = vmatpush.msra.mxu2 %v314_v50  ;;  %1254 = vmatpush.msra.mxu3 %v416_v51  ;;  %v710_v42 = vld [vmem:[#allocation6 + $0x13c0] sm:$0xff]  ;;  %v812_v43 = vld [vmem:[#allocation6 + $0x16f0] sm:$0xff] }
  0xb0   :  { %1196 = vmatpush.msra.mxu0 %v116_v52  ;;  %1215 = vmatpush.msra.mxu1 %v218_v53  ;;  %v512_v44 = vld [vmem:[#allocation6 + $0xd90] sm:$0xff]  ;;  %v614_v45 = vld [vmem:[#allocation6 + $0x10c0] sm:$0xff] }
  0xb1   :  { %1236 = vmatpush.msra.mxu2 %v308_v54  ;;  %1255 = vmatpush.msra.mxu3 %v410_v55  ;;  %v704_v46 = vld [vmem:[#allocation6 + $0x1390] sm:$0xff]  ;;  %v806_v47 = vld [vmem:[#allocation6 + $0x16c0] sm:$0xff] }
  0xb2   :  { %1197 = vmatpush.msra.mxu0 %v110_v56  ;;  %1216 = vmatpush.msra.mxu1 %v212_v57  ;;  %v506_v48 = vld [vmem:[#allocation6 + $0xd60] sm:$0xff]  ;;  %v608_v49 = vld [vmem:[#allocation6 + $0x1090] sm:$0xff] }
  0xb3   :  { %1237 = vmatpush.msra.mxu2 %v302_v58  ;;  %1256 = vmatpush.msra.mxu3 %v404_v59  ;;  %v698_v50 = vld [vmem:[#allocation6 + $0x1360] sm:$0xff]  ;;  %v800_v51 = vld [vmem:[#allocation6 + $0x1690] sm:$0xff] }
  0xb4   :  { %1198 = vmatpush.msra.mxu0 %v104_v61  ;;  %1217 = vmatpush.msra.mxu1 %v206_v62  ;;  %v500_v52 = vld [vmem:[#allocation6 + $0xd30] sm:$0xff]  ;;  %v602_v53 = vld [vmem:[#allocation6 + $0x1060] sm:$0xff] }
  0xb5   :  { %1238 = vmatpush.msra.mxu2 %v296_v63  ;;  %1257 = vmatpush.msra.mxu3 %v398_v0  ;;  %v692_v54 = vld [vmem:[#allocation6 + $0x1330] sm:$0xff]  ;;  %v794_v55 = vld [vmem:[#allocation6 + $0x1660] sm:$0xff] }
  0xb6   :  { %1199 = vmatpush.msra.mxu0 %v98_v3  ;;  %1218 = vmatpush.msra.mxu1 %v200_v4  ;;  %v494_v56 = vld [vmem:[#allocation6 + $0xd00] sm:$0xff]  ;;  %v596_v57 = vld [vmem:[#allocation6 + $0x1030] sm:$0xff] }
  0xb7   :  { %1239 = vmatpush.msra.mxu2 %v290_v5  ;;  %1258 = vmatpush.msra.mxu3 %v392_v6  ;;  %v686_v58 = vld [vmem:[#allocation6 + $0x1300] sm:$0xff]  ;;  %v788_v59 = vld [vmem:[#allocation6 + $0x1630] sm:$0xff] }
  0xb8   :  { %1200 = vmatpush.msra.mxu0 %v92_v8  ;;  %1219 = vmatpush.msra.mxu1 %v194_v9  ;;  %v488_v61 = vld [vmem:[#allocation6 + $0xcd0] sm:$0xff]  ;;  %v590_v62 = vld [vmem:[#allocation6 + $0x1000] sm:$0xff] }
  0xb9   :  { %1240 = vmatpush.msra.mxu2 %v284_v10  ;;  %1259 = vmatpush.msra.mxu3 %v386_v11  ;;  %v680_v63 = vld [vmem:[#allocation6 + $0x12d0] sm:$0xff]  ;;  %v782_v0 = vld [vmem:[#allocation6 + $0x1600] sm:$0xff] }
  0xba   :  { %1201 = vmatpush.msra.mxu0 %v86_v12  ;;  %1220 = vmatpush.msra.mxu1 %v188_v13  ;;  %v482_v3 = vld [vmem:[#allocation6 + $0xca0] sm:$0xff]  ;;  %v584_v4 = vld [vmem:[#allocation6 + $0xfd0] sm:$0xff] }
  0xbb   :  { %1241 = vmatpush.msra.mxu2 %v278_v14  ;;  %1260 = vmatpush.msra.mxu3 %v380_v15  ;;  %v674_v6 = vld [vmem:[#allocation6 + $0x12a0] sm:$0xff]  ;;  %v776_v8 = vld [vmem:[#allocation6 + $0x15d0] sm:$0xff] }
  0xbc   :  { %1202 = vmatpush.msra.mxu0 %v80_v60  ;;  %1221 = vmatpush.msra.mxu1 %v182_v17  ;;  %v476_v9 = vld [vmem:[#allocation6 + $0xc70] sm:$0xff]  ;;  %v578_v10 = vld [vmem:[#allocation6 + $0xfa0] sm:$0xff] }
  0xbd   :  { %1242 = vmatpush.msra.mxu2 %v272_v18  ;;  %1261 = vmatpush.msra.mxu3 %v374_v19  ;;  %v668_v11 = vld [vmem:[#allocation6 + $0x1270] sm:$0xff]  ;;  %v770_v12 = vld [vmem:[#allocation6 + $0x15a0] sm:$0xff] }
  0xbe   :  { %1267 = vmatpush.msrb.mxu0 %v554_v1  ;;  %1222 = vmatpush.msra.mxu1 %v176_v21  ;;  %v470_v14 = vld [vmem:[#allocation6 + $0xc40] sm:$0xff]  ;;  %v572_v15 = vld [vmem:[#allocation6 + $0xf70] sm:$0xff] }
  0xbf   :  { %1307 = vmatpush.msrb.mxu2 %v746_v2  ;;  %1262 = vmatpush.msra.mxu3 %v368_v23  ;;  %v662_v18 = vld [vmem:[#allocation6 + $0x1240] sm:$0xff]  ;;  %v764_v19 = vld [vmem:[#allocation6 + $0x1570] sm:$0xff] }
  0xc0   :  { %1268 = vmatpush.msrb.mxu0 %v548_v7  ;;  %1287 = vmatpush.msrb.mxu1 %v650_v24  ;;  %v464_v1 = vld [vmem:[#allocation6 + $0xc10] sm:$0xff]  ;;  %v566_v21 = vld [vmem:[#allocation6 + $0xf40] sm:$0xff] }
  0xc1   :  { %1308 = vmatpush.msrb.mxu2 %v740_v25  ;;  %1327 = vmatpush.msrb.mxu3 %v842_v26  ;;  %v656_v23 = vld [vmem:[#allocation6 + $0x1210] sm:$0xff]  ;;  %v758_v24 = vld [vmem:[#allocation6 + $0x1540] sm:$0xff]  ;;  %v2200_v26 = vld.sshfl [vmem:[#allocation1 + $0x10] sm:$0xff pattern:$0x73625140] }
  0xc2   :  { %1269 = vmatpush.msrb.mxu0 %v542_v28  ;;  %1288 = vmatpush.msrb.mxu1 %v644_v29  ;;  %v171_v28 = vld [vmem:[#allocation6 + $0x2e8] sm:$0xff] }
  0xc3   :  { %1309 = vmatpush.msrb.mxu2 %v734_v30  ;;  %1328 = vmatpush.msrb.mxu3 %v836_v31  ;;  %v363_v29 = vld [vmem:[#allocation6 + $0x8e8] sm:$0xff]  ;;  %v560_v30 = vld [vmem:[#allocation6 + $0xf10] sm:$0xff] }
  0xc4   :  { %1270 = vmatpush.msrb.mxu0 %v536_v16  ;;  %1289 = vmatpush.msrb.mxu1 %v638_v32  ;;  %v2203_v16 = vld.sshfl [vmem:[#allocation1] sm:$0xff pattern:$0x73625140]  ;;  %v752_v32 = vld [vmem:[#allocation6 + $0x1510] sm:$0xff] }
  0xc5   :  { %1310 = vmatpush.msrb.mxu2 %v728_v33  ;;  %1329 = vmatpush.msrb.mxu3 %v830_v34  ;;  %v2206_v34 = vld.sshfl [vmem:[#allocation1 + $0x18] sm:$0xff pattern:$0x73625140] }
  0xc6   :  { %1271 = vmatpush.msrb.mxu0 %v530_v20  ;;  %1290 = vmatpush.msrb.mxu1 %v632_v22  ;;  %v165_v20 = vld [vmem:[#allocation6 + $0x2b8] sm:$0xff]  ;;  %v267_v22 = vld [vmem:[#allocation6 + $0x5e8] sm:$0xff] }
  0xc7   :  { %1311 = vmatpush.msrb.mxu2 %v722_v35  ;;  %1330 = vmatpush.msrb.mxu3 %v824_v36  ;;  %v357_v35 = vld [vmem:[#allocation6 + $0x8b8] sm:$0xff]  ;;  %v459_v36 = vld [vmem:[#allocation6 + $0xbe8] sm:$0xff] }
  0xc8   :  { %1272 = vmatpush.msrb.mxu0 %v524_v37  ;;  %1291 = vmatpush.msrb.mxu1 %v626_v38  ;;  %v2209_v38 = vld.sshfl [vmem:[#allocation1 + $0x8] sm:$0xff pattern:$0x73625140] }
  0xc9   :  { %1312 = vmatpush.msrb.mxu2 %v716_v27  ;;  %1331 = vmatpush.msrb.mxu3 %v818_v39  ;;  %v159_v27 = vld [vmem:[#allocation6 + $0x288] sm:$0xff]  ;;  %v261_v39 = vld [vmem:[#allocation6 + $0x5b8] sm:$0xff] }
  0xca   :  { %1273 = vmatpush.msrb.mxu0 %v518_v40  ;;  %1292 = vmatpush.msrb.mxu1 %v620_v41 }
  0xcb   :  { %1313 = vmatpush.msrb.mxu2 %v710_v42  ;;  %1332 = vmatpush.msrb.mxu3 %v812_v43  ;;  %v351_v42 = vld [vmem:[#allocation6 + $0x888] sm:$0xff]  ;;  %v453_v43 = vld [vmem:[#allocation6 + $0xbb8] sm:$0xff] }
  0xcc   :  { %1274 = vmatpush.msrb.mxu0 %v512_v44  ;;  %1293 = vmatpush.msrb.mxu1 %v614_v45  ;;  %v153_v44 = vld [vmem:[#allocation6 + $0x258] sm:$0xff] }
  0xcd   :  { %1314 = vmatpush.msrb.mxu2 %v704_v46  ;;  %1333 = vmatpush.msrb.mxu3 %v806_v47  ;;  %v255_v46 = vld [vmem:[#allocation6 + $0x588] sm:$0xff]  ;;  %v345_v47 = vld [vmem:[#allocation6 + $0x858] sm:$0xff] }
  0xce   :  { %1275 = vmatpush.msrb.mxu0 %v506_v48  ;;  %1294 = vmatpush.msrb.mxu1 %v608_v49  ;;  %v447_v49 = vld [vmem:[#allocation6 + $0xb88] sm:$0xff] }
  0xcf   :  { %1315 = vmatpush.msrb.mxu2 %v698_v50  ;;  %1334 = vmatpush.msrb.mxu3 %v800_v51  ;;  %v2214_v51 = vld.sshfl [vmem:[#allocation1 + $0x30] sm:$0xff pattern:$0x73625140] }
  0xd0   :  { %1276 = vmatpush.msrb.mxu0 %v500_v52  ;;  %1295 = vmatpush.msrb.mxu1 %v602_v53  ;;  %v147_v52 = vld [vmem:[#allocation6 + $0x228] sm:$0xff]  ;;  %v249_v53 = vld [vmem:[#allocation6 + $0x558] sm:$0xff] }
  0xd1   :  { %1316 = vmatpush.msrb.mxu2 %v692_v54  ;;  %1335 = vmatpush.msrb.mxu3 %v794_v55  ;;  %v339_v54 = vld [vmem:[#allocation6 + $0x828] sm:$0xff] }
  0xd2   :  { %1277 = vmatpush.msrb.mxu0 %v494_v56  ;;  %1296 = vmatpush.msrb.mxu1 %v596_v57  ;;  %v2217_v55 = vld.sshfl [vmem:[#allocation1 + $0x20] sm:$0xff pattern:$0x73625140]  ;;  %v441_v56 = vld [vmem:[#allocation6 + $0xb58] sm:$0xff] }
  0xd3   :  { %1317 = vmatpush.msrb.mxu2 %v686_v58  ;;  %1336 = vmatpush.msrb.mxu3 %v788_v59  ;;  %v884_v5 = vpop.f32.mrf.mxu0  ;;  %v2220_v57 = vld.sshfl [vmem:[#allocation1 + $0x38] sm:$0xff pattern:$0x73625140]  ;;  %v141_v58 = vld [vmem:[#allocation6 + $0x1f8] sm:$0xff]  ;;  %v243_v59 = vld [vmem:[#allocation6 + $0x528] sm:$0xff] }
  0xd4   :  { %1278 = vmatpush.msrb.mxu0 %v488_v61  ;;  %1297 = vmatpush.msrb.mxu1 %v590_v62  ;;  %v333_v61 = vld [vmem:[#allocation6 + $0x7f8] sm:$0xff]  ;;  %v435_v62 = vld [vmem:[#allocation6 + $0xb28] sm:$0xff] }
  0xd5   :  { %1318 = vmatpush.msrb.mxu2 %v680_v63  ;;  %1337 = vmatpush.msrb.mxu3 %v782_v0  ;;  %v2223_v63 = vld.sshfl [vmem:[#allocation1 + $0x28] sm:$0xff pattern:$0x73625140]  ;;  %v135_v0 = vld [vmem:[#allocation6 + $0x1c8] sm:$0xff] }
  0xd6   :  { %1279 = vmatpush.msrb.mxu0 %v482_v3  ;;  %1298 = vmatpush.msrb.mxu1 %v584_v4  ;;  %v904_v13 = vpop.f32.mrf.mxu1  ;;  %v237_v3 = vld [vmem:[#allocation6 + $0x4f8] sm:$0xff]  ;;  %v327_v4 = vld [vmem:[#allocation6 + $0x7c8] sm:$0xff] }
  0xd7   :  { %1319 = vmatpush.msrb.mxu2 %v674_v6  ;;  %1338 = vmatpush.msrb.mxu3 %v776_v8  ;;  %v905_v60 = vadd.f32 %v904_v13, %v884_v5  ;;  %v924_v17 = vpop.f32.mrf.mxu2  ;;  %v429_v5 = vld [vmem:[#allocation6 + $0xaf8] sm:$0xff]  ;;  %v231_v8 = vld [vmem:[#allocation6 + $0x4c8] sm:$0xff] }
  0xd8   :  { %1280 = vmatpush.msrb.mxu0 %v476_v9  ;;  %1299 = vmatpush.msrb.mxu1 %v578_v10  ;;  %v129_v6 = vld [vmem:[#allocation6 + $0x198] sm:$0xff]  ;;  %v423_v10 = vld [vmem:[#allocation6 + $0xac8] sm:$0xff] }
  0xd9   :  { %1320 = vmatpush.msrb.mxu2 %v668_v11  ;;  %1339 = vmatpush.msrb.mxu3 %v770_v12  ;;  %v925_v2 = vadd.f32 %v924_v17, %v905_v60  ;;  %v321_v9 = vld [vmem:[#allocation6 + $0x798] sm:$0xff]  ;;  %v123_v11 = vld [vmem:[#allocation6 + $0x168] sm:$0xff] }
  0xda   :  { %1281 = vmatpush.msrb.mxu0 %v470_v14  ;;  %1300 = vmatpush.msrb.mxu1 %v572_v15  ;;  %v944_v7 = vpop.f32.mrf.mxu3  ;;  %v225_v12 = vld [vmem:[#allocation6 + $0x498] sm:$0xff]  ;;  %v315_v13 = vld [vmem:[#allocation6 + $0x768] sm:$0xff] }
  0xdb   :  { %1321 = vmatpush.msrb.mxu2 %v662_v18  ;;  %1340 = vmatpush.msrb.mxu3 %v764_v19  ;;  %v945_v25 = vadd.f32 %v944_v7, %v925_v2  ;;  %v417_v14 = vld [vmem:[#allocation6 + $0xa98] sm:$0xff]  ;;  %v219_v60 = vld [vmem:[#allocation6 + $0x468] sm:$0xff] }
  0xdc   :  { %1243 = vmatmul.f32.vlgmr.msra.gmra.mxu2 %v2200_v26  ;;  %1282 = vmatpush.msrb.mxu0 %v464_v1  ;;  %v117_v15 = vld [vmem:[#allocation6 + $0x138] sm:$0xff]  ;;  %v411_v18 = vld [vmem:[#allocation6 + $0xa68] sm:$0xff] }
  0xdd   :  { %1301 = vmatpush.msrb.mxu1 %v566_v21  ;;  %1322 = vmatpush.msrb.mxu2 %v656_v23  ;;  %v964_v31 = vpop.f32.mrf.mxu0  ;;  %v309_v17 = vld [vmem:[#allocation6 + $0x738] sm:$0xff]  ;;  %v111_v19 = vld [vmem:[#allocation6 + $0x108] sm:$0xff] }
  0xde   :  { %1341 = vmatpush.msrb.mxu3 %v758_v24  ;;  %1203 = vmatmul.f32.vlgmr.msra.gmra.mxu0 %v2203_v16  ;;  %v965_v33 = vadd.f32 %v964_v31, %v945_v25  ;;  %v213_v1 = vld [vmem:[#allocation6 + $0x438] sm:$0xff]  ;;  %v303_v2 = vld [vmem:[#allocation6 + $0x708] sm:$0xff] }
  0xdf   :  { %1263 = vmatmul.f32.vlgmr.msra.gmra.mxu3 %v2206_v34  ;;  %1347 = vmatpush.msra.mxu0 %v171_v28  ;;  %v405_v21 = vld [vmem:[#allocation6 + $0xa38] sm:$0xff]  ;;  %v207_v7 = vld [vmem:[#allocation6 + $0x408] sm:$0xff] }
  0xe0   :  { %1387 = vmatpush.msra.mxu2 %v363_v29  ;;  %1302 = vmatpush.msrb.mxu1 %v560_v30  ;;  %v984_v37 = vpop.f32.mrf.mxu1  ;;  %v105_v23 = vld [vmem:[#allocation6 + $0xd8] sm:$0xff]  ;;  %v399_v25 = vld [vmem:[#allocation6 + $0xa08] sm:$0xff] }
  0xe1   :  { %1342 = vmatpush.msrb.mxu3 %v752_v32  ;;  %1223 = vmatmul.f32.vlgmr.msra.gmra.mxu1 %v2209_v38  ;;  %v985_v40 = vadd.f32 %v984_v37, %v965_v33  ;;  %v1004_v41 = vpop.f32.mrf.mxu2  ;;  %v297_v24 = vld [vmem:[#allocation6 + $0x6d8] sm:$0xff]  ;;  %v99_v28 = vld [vmem:[#allocation6 + $0xa8] sm:$0xff] }
  0xe2   :  { %1348 = vmatpush.msra.mxu0 %v165_v20  ;;  %1367 = vmatpush.msra.mxu1 %v267_v22  ;;  %v201_v29 = vld [vmem:[#allocation6 + $0x3d8] sm:$0xff]  ;;  %v291_v30 = vld [vmem:[#allocation6 + $0x6a8] sm:$0xff] }
  0xe3   :  { %1388 = vmatpush.msra.mxu2 %v357_v35  ;;  %1407 = vmatpush.msra.mxu3 %v459_v36  ;;  %v1005_v45 = vadd.f32 %v1004_v41, %v985_v40  ;;  %v393_v31 = vld [vmem:[#allocation6 + $0x9d8] sm:$0xff]  ;;  %v195_v33 = vld [vmem:[#allocation6 + $0x3a8] sm:$0xff] }
  0xe4   :  { %1349 = vmatpush.msra.mxu0 %v159_v27  ;;  %1368 = vmatpush.msra.mxu1 %v261_v39  ;;  %v1024_v48 = vpop.f32.mrf.mxu3  ;;  %v93_v32 = vld [vmem:[#allocation6 + $0x78] sm:$0xff]  ;;  %v387_v22 = vld [vmem:[#allocation6 + $0x9a8] sm:$0xff] }
  0xe5   :  { %1389 = vmatpush.msra.mxu2 %v351_v42  ;;  %1408 = vmatpush.msra.mxu3 %v453_v43  ;;  %v2212_v50 = vadd.f32 %v1024_v48, %v1005_v45  ;;  %v285_v20 = vld [vmem:[#allocation6 + $0x678] sm:$0xff]  ;;  %v87_v35 = vld [vmem:[#allocation6 + $0x48] sm:$0xff] }
  0xe6   :  { %1323 = vmatmul.f32.vlgmr.msrb.gmra.mxu2 %v2214_v51  ;;  %1350 = vmatpush.msra.mxu0 %v153_v44  ;;  %v189_v36 = vld [vmem:[#allocation6 + $0x378] sm:$0xff]  ;;  %v279_v37 = vld [vmem:[#allocation6 + $0x648] sm:$0xff] }
  0xe7   :  { %1369 = vmatpush.msra.mxu1 %v255_v46  ;;  %1390 = vmatpush.msra.mxu2 %v345_v47  ;;  %v381_v27 = vld [vmem:[#allocation6 + $0x978] sm:$0xff]  ;;  %v183_v40 = vld [vmem:[#allocation6 + $0x348] sm:$0xff] }
  0xe8   :  { %1409 = vmatpush.msra.mxu3 %v447_v49  ;;  %1283 = vmatmul.f32.vlgmr.msrb.gmra.mxu0 %v2217_v55  ;;  %v81_v39 = vld [vmem:[#allocation6 + $0x18] sm:$0xff]  ;;  %v375_v42 = vld [vmem:[#allocation6 + $0x948] sm:$0xff] }
  0xe9   :  { %1343 = vmatmul.f32.vlgmr.msrb.gmra.mxu3 %v2220_v57  ;;  %1351 = vmatpush.msra.mxu0 %v147_v52  ;;  %v273_v41 = vld [vmem:[#allocation6 + $0x618] sm:$0xff]  ;;  %v555_v43 = vld [vmem:[#allocation6 + $0xee8] sm:$0xff] }
  0xea   :  { %1370 = vmatpush.msra.mxu1 %v249_v53  ;;  %1391 = vmatpush.msra.mxu2 %v339_v54  ;;  %v747_v44 = vld [vmem:[#allocation6 + $0x14e8] sm:$0xff]  ;;  %v177_v45 = vld [vmem:[#allocation6 + $0x318] sm:$0xff] }
  0xeb   :  { %1410 = vmatpush.msra.mxu3 %v441_v56  ;;  %1303 = vmatmul.f32.vlgmr.msrb.gmra.mxu1 %v2223_v63  ;;  %v369_v46 = vld [vmem:[#allocation6 + $0x918] sm:$0xff]  ;;  %v651_v48 = vld [vmem:[#allocation6 + $0x11e8] sm:$0xff] }
  0xec   :  { %1352 = vmatpush.msra.mxu0 %v141_v58  ;;  %1371 = vmatpush.msra.mxu1 %v243_v59  ;;  %v549_v47 = vld [vmem:[#allocation6 + $0xeb8] sm:$0xff]  ;;  %v843_v52 = vld [vmem:[#allocation6 + $0x17e8] sm:$0xff] }
  0xed   :  { %1392 = vmatpush.msra.mxu2 %v333_v61  ;;  %1411 = vmatpush.msra.mxu3 %v435_v62  ;;  %v741_v49 = vld [vmem:[#allocation6 + $0x14b8] sm:$0xff]  ;;  %v543_v53 = vld [vmem:[#allocation6 + $0xe88] sm:$0xff] }
  0xee   :  { %1353 = vmatpush.msra.mxu0 %v135_v0  ;;  %1372 = vmatpush.msra.mxu1 %v237_v3  ;;  %v645_v54 = vld [vmem:[#allocation6 + $0x11b8] sm:$0xff]  ;;  %v735_v56 = vld [vmem:[#allocation6 + $0x1488] sm:$0xff] }
  0xef   :  { %1393 = vmatpush.msra.mxu2 %v327_v4  ;;  %1412 = vmatpush.msra.mxu3 %v429_v5  ;;  %v837_v58 = vld [vmem:[#allocation6 + $0x17b8] sm:$0xff]  ;;  %v639_v61 = vld [vmem:[#allocation6 + $0x1188] sm:$0xff] }
  0xf0   :  { %1354 = vmatpush.msra.mxu0 %v129_v6  ;;  %1373 = vmatpush.msra.mxu1 %v231_v8  ;;  %v537_v59 = vld [vmem:[#allocation6 + $0xe58] sm:$0xff]  ;;  %v831_v0 = vld [vmem:[#allocation6 + $0x1788] sm:$0xff] }
  0xf1   :  { %1394 = vmatpush.msra.mxu2 %v321_v9  ;;  %1413 = vmatpush.msra.mxu3 %v423_v10  ;;  %v729_v62 = vld [vmem:[#allocation6 + $0x1458] sm:$0xff]  ;;  %v531_v3 = vld [vmem:[#allocation6 + $0xe28] sm:$0xff] }
  0xf2   :  { %1355 = vmatpush.msra.mxu0 %v123_v11  ;;  %1374 = vmatpush.msra.mxu1 %v225_v12  ;;  %v633_v4 = vld [vmem:[#allocation6 + $0x1158] sm:$0xff]  ;;  %v723_v5 = vld [vmem:[#allocation6 + $0x1428] sm:$0xff] }
  0xf3   :  { %1395 = vmatpush.msra.mxu2 %v315_v13  ;;  %1414 = vmatpush.msra.mxu3 %v417_v14  ;;  %v825_v6 = vld [vmem:[#allocation6 + $0x1758] sm:$0xff]  ;;  %v627_v9 = vld [vmem:[#allocation6 + $0x1128] sm:$0xff] }
  0xf4   :  { %1356 = vmatpush.msra.mxu0 %v117_v15  ;;  %1375 = vmatpush.msra.mxu1 %v219_v60  ;;  %v525_v8 = vld [vmem:[#allocation6 + $0xdf8] sm:$0xff]  ;;  %v819_v11 = vld [vmem:[#allocation6 + $0x1728] sm:$0xff] }
  0xf5   :  { %1396 = vmatpush.msra.mxu2 %v309_v17  ;;  %1415 = vmatpush.msra.mxu3 %v411_v18  ;;  %v717_v10 = vld [vmem:[#allocation6 + $0x13f8] sm:$0xff]  ;;  %v519_v12 = vld [vmem:[#allocation6 + $0xdc8] sm:$0xff] }
  0xf6   :  { %1357 = vmatpush.msra.mxu0 %v111_v19  ;;  %1376 = vmatpush.msra.mxu1 %v213_v1  ;;  %v621_v13 = vld [vmem:[#allocation6 + $0x10f8] sm:$0xff]  ;;  %v711_v14 = vld [vmem:[#allocation6 + $0x13c8] sm:$0xff] }
  0xf7   :  { %1397 = vmatpush.msra.mxu2 %v303_v2  ;;  %1416 = vmatpush.msra.mxu3 %v405_v21  ;;  %v813_v15 = vld [vmem:[#allocation6 + $0x16f8] sm:$0xff]  ;;  %v615_v17 = vld [vmem:[#allocation6 + $0x10c8] sm:$0xff] }
  0xf8   :  { %1358 = vmatpush.msra.mxu0 %v105_v23  ;;  %1377 = vmatpush.msra.mxu1 %v207_v7  ;;  %v513_v60 = vld [vmem:[#allocation6 + $0xd98] sm:$0xff]  ;;  %v807_v19 = vld [vmem:[#allocation6 + $0x16c8] sm:$0xff] }
  0xf9   :  { %1398 = vmatpush.msra.mxu2 %v297_v24  ;;  %1417 = vmatpush.msra.mxu3 %v399_v25  ;;  %v705_v18 = vld [vmem:[#allocation6 + $0x1398] sm:$0xff]  ;;  %v507_v1 = vld [vmem:[#allocation6 + $0xd68] sm:$0xff] }
  0xfa   :  { %1359 = vmatpush.msra.mxu0 %v99_v28  ;;  %1378 = vmatpush.msra.mxu1 %v201_v29  ;;  %v609_v2 = vld [vmem:[#allocation6 + $0x1098] sm:$0xff]  ;;  %v699_v21 = vld [vmem:[#allocation6 + $0x1368] sm:$0xff] }
  0xfb   :  { %1399 = vmatpush.msra.mxu2 %v291_v30  ;;  %1418 = vmatpush.msra.mxu3 %v393_v31  ;;  %v801_v23 = vld [vmem:[#allocation6 + $0x1698] sm:$0xff]  ;;  %v603_v24 = vld [vmem:[#allocation6 + $0x1068] sm:$0xff] }
  0xfc   :  { %1360 = vmatpush.msra.mxu0 %v93_v32  ;;  %1379 = vmatpush.msra.mxu1 %v195_v33  ;;  %v501_v7 = vld [vmem:[#allocation6 + $0xd38] sm:$0xff]  ;;  %v795_v28 = vld [vmem:[#allocation6 + $0x1668] sm:$0xff] }
  0xfd   :  { %1400 = vmatpush.msra.mxu2 %v285_v20  ;;  %1419 = vmatpush.msra.mxu3 %v387_v22  ;;  %v693_v25 = vld [vmem:[#allocation6 + $0x1338] sm:$0xff]  ;;  %v495_v30 = vld [vmem:[#allocation6 + $0xd08] sm:$0xff] }
  0xfe   :  { %1361 = vmatpush.msra.mxu0 %v87_v35  ;;  %1380 = vmatpush.msra.mxu1 %v189_v36  ;;  %v597_v31 = vld [vmem:[#allocation6 + $0x1038] sm:$0xff]  ;;  %v687_v32 = vld [vmem:[#allocation6 + $0x1308] sm:$0xff] }
  0xff   :  { %1401 = vmatpush.msra.mxu2 %v279_v37  ;;  %1420 = vmatpush.msra.mxu3 %v381_v27  ;;  %v789_v33 = vld [vmem:[#allocation6 + $0x1638] sm:$0xff]  ;;  %v591_v35 = vld [vmem:[#allocation6 + $0x1008] sm:$0xff] }
 0x100   :  { %1362 = vmatpush.msra.mxu0 %v81_v39  ;;  %1381 = vmatpush.msra.mxu1 %v183_v40  ;;  %v489_v22 = vld [vmem:[#allocation6 + $0xcd8] sm:$0xff]  ;;  %v783_v39 = vld [vmem:[#allocation6 + $0x1608] sm:$0xff] }
 0x101   :  { %1402 = vmatpush.msra.mxu2 %v273_v41  ;;  %1421 = vmatpush.msra.mxu3 %v375_v42  ;;  %v681_v27 = vld [vmem:[#allocation6 + $0x12d8] sm:$0xff]  ;;  %v483_v40 = vld [vmem:[#allocation6 + $0xca8] sm:$0xff] }
 0x102   :  { %1427 = vmatpush.msrb.mxu0 %v555_v43  ;;  %1382 = vmatpush.msra.mxu1 %v177_v45  ;;  %v585_v42 = vld [vmem:[#allocation6 + $0xfd8] sm:$0xff]  ;;  %v675_v43 = vld [vmem:[#allocation6 + $0x12a8] sm:$0xff] }
 0x103   :  { %1467 = vmatpush.msrb.mxu2 %v747_v44  ;;  %1422 = vmatpush.msra.mxu3 %v369_v46  ;;  %v777_v45 = vld [vmem:[#allocation6 + $0x15d8] sm:$0xff] }
 0x104   :  { %1428 = vmatpush.msrb.mxu0 %v549_v47  ;;  %1447 = vmatpush.msrb.mxu1 %v651_v48  ;;  %v477_v46 = vld [vmem:[#allocation6 + $0xc78] sm:$0xff]  ;;  %v579_v47 = vld [vmem:[#allocation6 + $0xfa8] sm:$0xff] }
 0x105   :  { %1468 = vmatpush.msrb.mxu2 %v741_v49  ;;  %1487 = vmatpush.msrb.mxu3 %v843_v52  ;;  %v669_v48 = vld [vmem:[#allocation6 + $0x1278] sm:$0xff]  ;;  %v771_v52 = vld [vmem:[#allocation6 + $0x15a8] sm:$0xff] }
 0x106   :  { %1429 = vmatpush.msrb.mxu0 %v543_v53  ;;  %1448 = vmatpush.msrb.mxu1 %v645_v54  ;;  %v471_v54 = vld [vmem:[#allocation6 + $0xc48] sm:$0xff] }
 0x107   :  { %1469 = vmatpush.msrb.mxu2 %v735_v56  ;;  %1488 = vmatpush.msrb.mxu3 %v837_v58  ;;  %v573_v56 = vld [vmem:[#allocation6 + $0xf78] sm:$0xff] }
 0x108   :  { %1430 = vmatpush.msrb.mxu0 %v537_v59  ;;  %1449 = vmatpush.msrb.mxu1 %v639_v61  ;;  %v765_v58 = vld [vmem:[#allocation6 + $0x1578] sm:$0xff]  ;;  %v567_v61 = vld [vmem:[#allocation6 + $0xf48] sm:$0xff] }
 0x109   :  { %1470 = vmatpush.msrb.mxu2 %v729_v62  ;;  %1489 = vmatpush.msrb.mxu3 %v831_v0  ;;  %v465_v59 = vld [vmem:[#allocation6 + $0xc18] sm:$0xff]  ;;  %v759_v0 = vld [vmem:[#allocation6 + $0x1548] sm:$0xff] }
 0x10a   :  { %1431 = vmatpush.msrb.mxu0 %v531_v3  ;;  %1450 = vmatpush.msrb.mxu1 %v633_v4  ;;  %v364_v4 = vld [vmem:[#allocation6 + $0x8f0] sm:$0xff] }
 0x10b   :  { %1471 = vmatpush.msrb.mxu2 %v723_v5  ;;  %1490 = vmatpush.msrb.mxu3 %v825_v6  ;;  %v561_v5 = vld [vmem:[#allocation6 + $0xf18] sm:$0xff] }
 0x10c   :  { %1432 = vmatpush.msrb.mxu0 %v525_v8  ;;  %1451 = vmatpush.msrb.mxu1 %v627_v9  ;;  %v753_v6 = vld [vmem:[#allocation6 + $0x1518] sm:$0xff] }
 0x10d   :  { %1472 = vmatpush.msrb.mxu2 %v717_v10  ;;  %1491 = vmatpush.msrb.mxu3 %v819_v11  ;;  %v268_v10 = vld [vmem:[#allocation6 + $0x5f0] sm:$0xff]  ;;  %v358_v11 = vld [vmem:[#allocation6 + $0x8c0] sm:$0xff] }
 0x10e   :  { %1433 = vmatpush.msrb.mxu0 %v519_v12  ;;  %1452 = vmatpush.msrb.mxu1 %v621_v13  ;;  %v460_v12 = vld [vmem:[#allocation6 + $0xbf0] sm:$0xff] }
 0x10f   :  { %1473 = vmatpush.msrb.mxu2 %v711_v14  ;;  %1492 = vmatpush.msrb.mxu3 %v813_v15  ;;  %v160_v13 = vld [vmem:[#allocation6 + $0x290] sm:$0xff]  ;;  %v262_v14 = vld [vmem:[#allocation6 + $0x5c0] sm:$0xff] }
 0x110   :  { %1434 = vmatpush.msrb.mxu0 %v513_v60  ;;  %1453 = vmatpush.msrb.mxu1 %v615_v17  ;;  %v454_v60 = vld [vmem:[#allocation6 + $0xbc0] sm:$0xff] }
 0x111   :  { %1474 = vmatpush.msrb.mxu2 %v705_v18  ;;  %1493 = vmatpush.msrb.mxu3 %v807_v19  ;;  %v1044_v29 = vpop.f32.mrf.mxu0  ;;  %v154_v18 = vld [vmem:[#allocation6 + $0x260] sm:$0xff]  ;;  %v256_v19 = vld [vmem:[#allocation6 + $0x590] sm:$0xff] }
 0x112   :  { %1435 = vmatpush.msrb.mxu0 %v507_v1  ;;  %1454 = vmatpush.msrb.mxu1 %v609_v2  ;;  %v448_v1 = vld [vmem:[#allocation6 + $0xb90] sm:$0xff]  ;;  %v250_v2 = vld [vmem:[#allocation6 + $0x560] sm:$0xff] }
 0x113   :  { %1475 = vmatpush.msrb.mxu2 %v699_v21  ;;  %1494 = vmatpush.msrb.mxu3 %v801_v23  ;;  %v1961_v23 = vld [vmem:[#allocation8] ss:$0 sm:$0xff] }
 0x114   :  { %1436 = vmatpush.msrb.mxu0 %v501_v7  ;;  %1455 = vmatpush.msrb.mxu1 %v603_v24  ;;  %v1064_v20 = vpop.f32.mrf.mxu1  ;;  %v340_v7 = vld [vmem:[#allocation6 + $0x830] sm:$0xff]  ;;  %v442_v24 = vld [vmem:[#allocation6 + $0xb60] sm:$0xff] }
 0x115   :  { %1476 = vmatpush.msrb.mxu2 %v693_v25  ;;  %1495 = vmatpush.msrb.mxu3 %v795_v28  ;;  %v1065_v36 = vadd.f32 %v1064_v20, %v1044_v29  ;;  %v1084_v37 = vpop.f32.mrf.mxu2  ;;  %v142_v25 = vld [vmem:[#allocation6 + $0x200] sm:$0xff]  ;;  %v436_v29 = vld [vmem:[#allocation6 + $0xb30] sm:$0xff] }
 0x116   :  { %1437 = vmatpush.msrb.mxu0 %v495_v30  ;;  %1456 = vmatpush.msrb.mxu1 %v597_v31  ;;  %v334_v28 = vld [vmem:[#allocation6 + $0x800] sm:$0xff]  ;;  %v136_v30 = vld [vmem:[#allocation6 + $0x1d0] sm:$0xff] }
 0x117   :  { %1477 = vmatpush.msrb.mxu2 %v687_v32  ;;  %1496 = vmatpush.msrb.mxu3 %v789_v33  ;;  %v1085_v41 = vadd.f32 %v1084_v37, %v1065_v36  ;;  %v238_v31 = vld [vmem:[#allocation6 + $0x500] sm:$0xff]  ;;  %v328_v33 = vld [vmem:[#allocation6 + $0x7d0] sm:$0xff] }
 0x118   :  { %1438 = vmatpush.msrb.mxu0 %v489_v22  ;;  %1457 = vmatpush.msrb.mxu1 %v591_v35  ;;  %v1104_v44 = vpop.f32.mrf.mxu3  ;;  %v430_v20 = vld [vmem:[#allocation6 + $0xb00] sm:$0xff]  ;;  %v232_v35 = vld [vmem:[#allocation6 + $0x4d0] sm:$0xff] }
 0x119   :  { %1478 = vmatpush.msrb.mxu2 %v681_v27  ;;  %1497 = vmatpush.msrb.mxu3 %v783_v39  ;;  %v1105_v49 = vadd.f32 %v1104_v44, %v1085_v41  ;;  %v130_v22 = vld [vmem:[#allocation6 + $0x1a0] sm:$0xff]  ;;  %v424_v37 = vld [vmem:[#allocation6 + $0xad0] sm:$0xff] }
 0x11a   :  { %1403 = vmatmul.f32.vlgmr.msra.gmra.mxu2 %v2200_v26  ;;  %1439 = vmatpush.msrb.mxu0 %v483_v40  ;;  %v663_v26 = vld [vmem:[#allocation6 + $0x1248] sm:$0xff]  ;;  %v322_v36 = vld [vmem:[#allocation6 + $0x7a0] sm:$0xff]  ;;  %v124_v39 = vld [vmem:[#allocation6 + $0x170] sm:$0xff] }
 0x11b   :  { %1458 = vmatpush.msrb.mxu1 %v585_v42  ;;  %1479 = vmatpush.msrb.mxu2 %v675_v43  ;;  %v1124_v53 = vpop.f32.mrf.mxu0  ;;  %v226_v40 = vld [vmem:[#allocation6 + $0x4a0] sm:$0xff]  ;;  %v316_v41 = vld [vmem:[#allocation6 + $0x770] sm:$0xff] }
 0x11c   :  { %1498 = vmatpush.msrb.mxu3 %v777_v45  ;;  %1363 = vmatmul.f32.vlgmr.msra.gmra.mxu0 %v2203_v16  ;;  %v1125_v62 = vadd.f32 %v1124_v53, %v1105_v49  ;;  %v657_v16 = vld [vmem:[#allocation6 + $0x1218] sm:$0xff]  ;;  %v418_v42 = vld [vmem:[#allocation6 + $0xaa0] sm:$0xff]  ;;  %v220_v44 = vld [vmem:[#allocation6 + $0x470] sm:$0xff] }
 0x11d   :  { %1423 = vmatmul.f32.vlgmr.msra.gmra.mxu3 %v2206_v34  ;;  %1440 = vmatpush.msrb.mxu0 %v477_v46  ;;  %v172_v34 = vld [vmem:[#allocation6 + $0x2f0] sm:$0xff]  ;;  %v118_v43 = vld [vmem:[#allocation6 + $0x140] sm:$0xff] }
 0x11e   :  { %1459 = vmatpush.msrb.mxu1 %v579_v47  ;;  %1480 = vmatpush.msrb.mxu2 %v669_v48  ;;  %v1144_v3 = vpop.f32.mrf.mxu1  ;;  %v310_v45 = vld [vmem:[#allocation6 + $0x740] sm:$0xff]  ;;  %v412_v46 = vld [vmem:[#allocation6 + $0xa70] sm:$0xff] }
 0x11f   :  { %1499 = vmatpush.msrb.mxu3 %v771_v52  ;;  %1383 = vmatmul.f32.vlgmr.msra.gmra.mxu1 %v2209_v38  ;;  %v1145_v8 = vadd.f32 %v1144_v3, %v1125_v62  ;;  %v166_v38 = vld [vmem:[#allocation6 + $0x2c0] sm:$0xff]  ;;  %v1164_v9 = vpop.f32.mrf.mxu2  ;;  %v112_v47 = vld [vmem:[#allocation6 + $0x110] sm:$0xff] }
 0x120   :  { %1441 = vmatpush.msrb.mxu0 %v471_v54  ;;  %1460 = vmatpush.msrb.mxu1 %v573_v56  ;;  %v214_v48 = vld [vmem:[#allocation6 + $0x440] sm:$0xff]  ;;  %v304_v49 = vld [vmem:[#allocation6 + $0x710] sm:$0xff] }
 0x121   :  { %1481 = vmatpush.msrb.mxu2 %v663_v26  ;;  %1500 = vmatpush.msrb.mxu3 %v765_v58  ;;  %v1165_v15 = vadd.f32 %v1164_v9, %v1145_v8  ;;  %v406_v52 = vld [vmem:[#allocation6 + $0xa40] sm:$0xff]  ;;  %v208_v54 = vld [vmem:[#allocation6 + $0x410] sm:$0xff] }
 0x122   :  { %1442 = vmatpush.msrb.mxu0 %v465_v59  ;;  %1461 = vmatpush.msrb.mxu1 %v567_v61  ;;  %v1184_v17 = vpop.f32.mrf.mxu3  ;;  %v106_v53 = vld [vmem:[#allocation6 + $0xe0] sm:$0xff]  ;;  %v400_v26 = vld [vmem:[#allocation6 + $0xa10] sm:$0xff] }
 0x123   :  { %1482 = vmatpush.msrb.mxu2 %v657_v16  ;;  %1501 = vmatpush.msrb.mxu3 %v759_v0  ;;  %v1185_v21 = vadd.f32 %v1184_v17, %v1165_v15  ;;  %v298_v56 = vld [vmem:[#allocation6 + $0x6e0] sm:$0xff]  ;;  %v100_v58 = vld [vmem:[#allocation6 + $0xb0] sm:$0xff] }
 0x124   :  { %1483 = vmatmul.f32.vlgmr.msrb.gmra.mxu2 %v2214_v51  ;;  %1507 = vmatpush.msra.mxu0 %v172_v34  ;;  %v352_v51 = vld [vmem:[#allocation6 + $0x890] sm:$0xff]  ;;  %v202_v59 = vld [vmem:[#allocation6 + $0x3e0] sm:$0xff] }
 0x125   :  { %1547 = vmatpush.msra.mxu2 %v364_v4  ;;  %1462 = vmatpush.msrb.mxu1 %v561_v5  ;;  %v2234_v32 = vadd.f32 %v1961_v23, %v1185_v21  ;;  %v292_v61 = vld [vmem:[#allocation6 + $0x6b0] sm:$0xff]  ;;  %v394_v62 = vld [vmem:[#allocation6 + $0x9e0] sm:$0xff] }
 0x126   :  { %1502 = vmatpush.msrb.mxu3 %v753_v6  ;;  %1443 = vmatmul.f32.vlgmr.msrb.gmra.mxu0 %v2217_v55  ;;  %v346_v55 = vld [vmem:[#allocation6 + $0x860] sm:$0xff]  ;;  %v196_v0 = vld [vmem:[#allocation6 + $0x3b0] sm:$0xff] }
 0x127   :  { %1503 = vmatmul.f32.vlgmr.msrb.gmra.mxu3 %v2220_v57  ;;  %1508 = vmatpush.msra.mxu0 %v166_v38  ;;  %v148_v57 = vld [vmem:[#allocation6 + $0x230] sm:$0xff]  ;;  %v1836_v27 = vsel %vm1831_vm0, %v2234_v32, -inf  ;;  %v94_v16 = vld [vmem:[#allocation6 + $0x80] sm:$0xff] }
 0x128   :  { %1527 = vmatpush.msra.mxu1 %v268_v10  ;;  %1548 = vmatpush.msra.mxu2 %v358_v11  ;;  %v286_v3 = vld [vmem:[#allocation6 + $0x680] sm:$0xff]  ;;  %v388_v34 = vld [vmem:[#allocation6 + $0x9b0] sm:$0xff] }
 0x129   :  { %1567 = vmatpush.msra.mxu3 %v460_v12  ;;  %1463 = vmatmul.f32.vlgmr.msrb.gmra.mxu1 %v2223_v63  ;;  %v244_v63 = vld [vmem:[#allocation6 + $0x530] sm:$0xff]  ;;  %v190_v5 = vld [vmem:[#allocation6 + $0x380] sm:$0xff] }
 0x12a   :  { %1509 = vmatpush.msra.mxu0 %v160_v13  ;;  %1528 = vmatpush.msra.mxu1 %v262_v14  ;;  %v88_v4 = vld [vmem:[#allocation6 + $0x50] sm:$0xff]  ;;  %v382_v8 = vld [vmem:[#allocation6 + $0x980] sm:$0xff] }
 0x12b   :  { %1549 = vmatpush.msra.mxu2 %v352_v51  ;;  %1568 = vmatpush.msra.mxu3 %v454_v60  ;;  %v280_v6 = vld [vmem:[#allocation6 + $0x650] sm:$0xff]  ;;  %v82_v38 = vld [vmem:[#allocation6 + $0x20] sm:$0xff] }
 0x12c   :  { %1510 = vmatpush.msra.mxu0 %v154_v18  ;;  %1529 = vmatpush.msra.mxu1 %v256_v19  ;;  %v184_v9 = vld [vmem:[#allocation6 + $0x350] sm:$0xff]  ;;  %v274_v10 = vld [vmem:[#allocation6 + $0x620] sm:$0xff] }
 0x12d   :  { %1550 = vmatpush.msra.mxu2 %v346_v55  ;;  %1569 = vmatpush.msra.mxu3 %v448_v1  ;;  %v376_v11 = vld [vmem:[#allocation6 + $0x950] sm:$0xff]  ;;  %v178_v14 = vld [vmem:[#allocation6 + $0x320] sm:$0xff] }
 0x12e   :  { %1511 = vmatpush.msra.mxu0 %v148_v57  ;;  %1530 = vmatpush.msra.mxu1 %v250_v2  ;;  %v556_v12 = vld [vmem:[#allocation6 + $0xef0] sm:$0xff]  ;;  %v370_v15 = vld [vmem:[#allocation6 + $0x920] sm:$0xff] }
 0x12f   :  { %1551 = vmatpush.msra.mxu2 %v340_v7  ;;  %1570 = vmatpush.msra.mxu3 %v442_v24  ;;  %v748_v13 = vld [vmem:[#allocation6 + $0x14f0] sm:$0xff]  ;;  %v550_v51 = vld [vmem:[#allocation6 + $0xec0] sm:$0xff] }
 0x130   :  { %1512 = vmatpush.msra.mxu0 %v142_v25  ;;  %1531 = vmatpush.msra.mxu1 %v244_v63  ;;  %v652_v60 = vld [vmem:[#allocation6 + $0x11f0] sm:$0xff]  ;;  %v742_v17 = vld [vmem:[#allocation6 + $0x14c0] sm:$0xff] }
 0x131   :  { %1552 = vmatpush.msra.mxu2 %v334_v28  ;;  %1571 = vmatpush.msra.mxu3 %v436_v29  ;;  %v844_v18 = vld [vmem:[#allocation6 + $0x17f0] sm:$0xff]  ;;  %v646_v55 = vld [vmem:[#allocation6 + $0x11c0] sm:$0xff] }
 0x132   :  { %1513 = vmatpush.msra.mxu0 %v136_v30  ;;  %1532 = vmatpush.msra.mxu1 %v238_v31  ;;  %v544_v19 = vld [vmem:[#allocation6 + $0xe90] sm:$0xff]  ;;  %v838_v57 = vld [vmem:[#allocation6 + $0x17c0] sm:$0xff] }
 0x133   :  { %1553 = vmatpush.msra.mxu2 %v328_v33  ;;  %1572 = vmatpush.msra.mxu3 %v430_v20  ;;  %v736_v1 = vld [vmem:[#allocation6 + $0x1490] sm:$0xff]  ;;  %v538_v2 = vld [vmem:[#allocation6 + $0xe60] sm:$0xff] }
 0x134   :  { %1514 = vmatpush.msra.mxu0 %v130_v22  ;;  %1533 = vmatpush.msra.mxu1 %v232_v35  ;;  %v640_v21 = vld [vmem:[#allocation6 + $0x1190] sm:$0xff]  ;;  %v730_v23 = vld [vmem:[#allocation6 + $0x1460] sm:$0xff] }
 0x135   :  { %1554 = vmatpush.msra.mxu2 %v322_v36  ;;  %1573 = vmatpush.msra.mxu3 %v424_v37  ;;  %v832_v7 = vld [vmem:[#allocation6 + $0x1790] sm:$0xff]  ;;  %v634_v25 = vld [vmem:[#allocation6 + $0x1160] sm:$0xff] }
 0x136   :  { %1837 = vmax.xlane.f32.xlu0 %v1836_v27  ;;  %1515 = vmatpush.msra.mxu0 %v124_v39  ;;  %v532_v24 = vld [vmem:[#allocation6 + $0xe30] sm:$0xff]  ;;  %v826_v28 = vld [vmem:[#allocation6 + $0x1760] sm:$0xff] }
 0x137   :  { %1534 = vmatpush.msra.mxu1 %v226_v40  ;;  %1555 = vmatpush.msra.mxu2 %v316_v41  ;;  %v724_v63 = vld [vmem:[#allocation6 + $0x1430] sm:$0xff]  ;;  %v526_v29 = vld [vmem:[#allocation6 + $0xe00] sm:$0xff] }
 0x138   :  { %1574 = vmatpush.msra.mxu3 %v418_v42  ;;  %1516 = vmatpush.msra.mxu0 %v118_v43  ;;  %v628_v30 = vld [vmem:[#allocation6 + $0x1130] sm:$0xff]  ;;  %v718_v31 = vld [vmem:[#allocation6 + $0x1400] sm:$0xff] }
 0x139   :  { %1535 = vmatpush.msra.mxu1 %v220_v44  ;;  %1556 = vmatpush.msra.mxu2 %v310_v45  ;;  %v820_v33 = vld [vmem:[#allocation6 + $0x1730] sm:$0xff]  ;;  %v622_v22 = vld [vmem:[#allocation6 + $0x1100] sm:$0xff] }
 0x13a   :  { %1575 = vmatpush.msra.mxu3 %v412_v46  ;;  %1517 = vmatpush.msra.mxu0 %v112_v47  ;;  %v520_v20 = vld [vmem:[#allocation6 + $0xdd0] sm:$0xff]  ;;  %v814_v36 = vld [vmem:[#allocation6 + $0x1700] sm:$0xff] }
 0x13b   :  { %1536 = vmatpush.msra.mxu1 %v214_v48  ;;  %1557 = vmatpush.msra.mxu2 %v304_v49  ;;  %v712_v35 = vld [vmem:[#allocation6 + $0x13d0] sm:$0xff]  ;;  %v514_v37 = vld [vmem:[#allocation6 + $0xda0] sm:$0xff] }
 0x13c   :  { %1576 = vmatpush.msra.mxu3 %v406_v52  ;;  %1518 = vmatpush.msra.mxu0 %v106_v53  ;;  %v616_v27 = vld [vmem:[#allocation6 + $0x10d0] sm:$0xff]  ;;  %v706_v39 = vld [vmem:[#allocation6 + $0x13a0] sm:$0xff] }
 0x13d   :  { %1537 = vmatpush.msra.mxu1 %v208_v54  ;;  %1558 = vmatpush.msra.mxu2 %v298_v56  ;;  %v808_v40 = vld [vmem:[#allocation6 + $0x16d0] sm:$0xff]  ;;  %v610_v42 = vld [vmem:[#allocation6 + $0x10a0] sm:$0xff] }
 0x13e   :  { %1577 = vmatpush.msra.mxu3 %v400_v26  ;;  %1519 = vmatpush.msra.mxu0 %v100_v58  ;;  %v508_v41 = vld [vmem:[#allocation6 + $0xd70] sm:$0xff]  ;;  %v802_v44 = vld [vmem:[#allocation6 + $0x16a0] sm:$0xff] }
 0x13f   :  { %1538 = vmatpush.msra.mxu1 %v202_v59  ;;  %1559 = vmatpush.msra.mxu2 %v292_v61  ;;  %v700_v43 = vld [vmem:[#allocation6 + $0x1370] sm:$0xff]  ;;  %v502_v45 = vld [vmem:[#allocation6 + $0xd40] sm:$0xff] }
 0x140   :  { %1578 = vmatpush.msra.mxu3 %v394_v62  ;;  %1520 = vmatpush.msra.mxu0 %v94_v16  ;;  %v604_v46 = vld [vmem:[#allocation6 + $0x1070] sm:$0xff]  ;;  %v694_v47 = vld [vmem:[#allocation6 + $0x1340] sm:$0xff] }
 0x141   :  { %1539 = vmatpush.msra.mxu1 %v196_v0  ;;  %1560 = vmatpush.msra.mxu2 %v286_v3  ;;  %v796_v48 = vld [vmem:[#allocation6 + $0x1670] sm:$0xff]  ;;  %v598_v52 = vld [vmem:[#allocation6 + $0x1040] sm:$0xff] }
 0x142   :  { %1579 = vmatpush.msra.mxu3 %v388_v34  ;;  %1521 = vmatpush.msra.mxu0 %v88_v4  ;;  %v496_v49 = vld [vmem:[#allocation6 + $0xd10] sm:$0xff]  ;;  %v790_v54 = vld [vmem:[#allocation6 + $0x1640] sm:$0xff] }
 0x143   :  { %1540 = vmatpush.msra.mxu1 %v190_v5  ;;  %1561 = vmatpush.msra.mxu2 %v280_v6  ;;  %v688_v53 = vld [vmem:[#allocation6 + $0x1310] sm:$0xff]  ;;  %v490_v56 = vld [vmem:[#allocation6 + $0xce0] sm:$0xff] }
 0x144   :  { %1580 = vmatpush.msra.mxu3 %v382_v8  ;;  %1522 = vmatpush.msra.mxu0 %v82_v38  ;;  %v592_v26 = vld [vmem:[#allocation6 + $0x1010] sm:$0xff]  ;;  %v682_v58 = vld [vmem:[#allocation6 + $0x12e0] sm:$0xff] }
 0x145   :  { %1541 = vmatpush.msra.mxu1 %v184_v9  ;;  %1562 = vmatpush.msra.mxu2 %v274_v10  ;;  %v784_v59 = vld [vmem:[#allocation6 + $0x1610] sm:$0xff]  ;;  %v586_v16 = vld [vmem:[#allocation6 + $0xfe0] sm:$0xff] }
 0x146   :  { %1581 = vmatpush.msra.mxu3 %v376_v11  ;;  %1587 = vmatpush.msrb.mxu0 %v556_v12  ;;  %v484_v61 = vld [vmem:[#allocation6 + $0xcb0] sm:$0xff]  ;;  %v778_v3 = vld [vmem:[#allocation6 + $0x15e0] sm:$0xff] }
 0x147   :  { %1627 = vmatpush.msrb.mxu2 %v748_v13  ;;  %1542 = vmatpush.msra.mxu1 %v178_v14  ;;  %v676_v0 = vld [vmem:[#allocation6 + $0x12b0] sm:$0xff]  ;;  %v478_v34 = vld [vmem:[#allocation6 + $0xc80] sm:$0xff] }
 0x148   :  { %1582 = vmatpush.msra.mxu3 %v370_v15  ;;  %1588 = vmatpush.msrb.mxu0 %v550_v51  ;;  %v580_v4 = vld [vmem:[#allocation6 + $0xfb0] sm:$0xff]  ;;  %v670_v5 = vld [vmem:[#allocation6 + $0x1280] sm:$0xff] }
 0x149   :  { %1607 = vmatpush.msrb.mxu1 %v652_v60  ;;  %1628 = vmatpush.msrb.mxu2 %v742_v17  ;;  %v772_v8 = vld [vmem:[#allocation6 + $0x15b0] sm:$0xff]  ;;  %v574_v11 = vld [vmem:[#allocation6 + $0xf80] sm:$0xff] }
 0x14a   :  { %1647 = vmatpush.msrb.mxu3 %v844_v18  ;;  %1589 = vmatpush.msrb.mxu0 %v544_v19  ;;  %v472_v38 = vld [vmem:[#allocation6 + $0xc50] sm:$0xff]  ;;  %v766_v13 = vld [vmem:[#allocation6 + $0x1580] sm:$0xff] }
 0x14b   :  { %1608 = vmatpush.msrb.mxu1 %v646_v55  ;;  %1629 = vmatpush.msrb.mxu2 %v736_v1  ;;  %v664_v12 = vld [vmem:[#allocation6 + $0x1250] sm:$0xff]  ;;  %v466_v15 = vld [vmem:[#allocation6 + $0xc20] sm:$0xff]  ;;  %v2238_v55 = vld.sshfl [vmem:[#allocation1 + $0x10] sm:$0xff pattern:$0x73625140] }
 0x14c   :  { %1648 = vmatpush.msrb.mxu3 %v838_v57  ;;  %1590 = vmatpush.msrb.mxu0 %v538_v2  ;;  %v568_v51 = vld [vmem:[#allocation6 + $0xf50] sm:$0xff]  ;;  %v658_v17 = vld [vmem:[#allocation6 + $0x1220] sm:$0xff]  ;;  %v173_v1 = vld [vmem:[#allocation6 + $0x2f8] sm:$0xff] }
 0x14d   :  { %1609 = vmatpush.msrb.mxu1 %v640_v21  ;;  %1630 = vmatpush.msrb.mxu2 %v730_v23  ;;  %v760_v18 = vld [vmem:[#allocation6 + $0x1550] sm:$0xff]  ;;  %v365_v57 = vld [vmem:[#allocation6 + $0x8f8] sm:$0xff]  ;;  %v562_v21 = vld [vmem:[#allocation6 + $0xf20] sm:$0xff] }
 0x14e   :  { %1649 = vmatpush.msrb.mxu3 %v832_v7  ;;  %1591 = vmatpush.msrb.mxu0 %v532_v24  ;;  %v754_v23 = vld [vmem:[#allocation6 + $0x1520] sm:$0xff]  ;;  %v2241_v24 = vld.sshfl [vmem:[#allocation1] sm:$0xff pattern:$0x73625140] }
 0x14f   :  { %1610 = vmatpush.msrb.mxu1 %v634_v25  ;;  %1631 = vmatpush.msrb.mxu2 %v724_v63  ;;  %v2244_v25 = vld.sshfl [vmem:[#allocation1 + $0x18] sm:$0xff pattern:$0x73625140]  ;;  %v167_v63 = vld [vmem:[#allocation6 + $0x2c8] sm:$0xff] }
 0x150   :  { %1650 = vmatpush.msrb.mxu3 %v826_v28  ;;  %1592 = vmatpush.msrb.mxu0 %v526_v29  ;;  %v269_v28 = vld [vmem:[#allocation6 + $0x5f8] sm:$0xff]  ;;  %v359_v29 = vld [vmem:[#allocation6 + $0x8c8] sm:$0xff] }
 0x151   :  { %1611 = vmatpush.msrb.mxu1 %v628_v30  ;;  %1632 = vmatpush.msrb.mxu2 %v718_v31  ;;  %v461_v31 = vld [vmem:[#allocation6 + $0xbf8] sm:$0xff] }
 0x152   :  { %1651 = vmatpush.msrb.mxu3 %v820_v33  ;;  %1593 = vmatpush.msrb.mxu0 %v520_v20  ;;  %v161_v33 = vld [vmem:[#allocation6 + $0x298] sm:$0xff] }
 0x153   :  { %1612 = vmatpush.msrb.mxu1 %v622_v22  ;;  %1633 = vmatpush.msrb.mxu2 %v712_v35  ;;  %v2247_v35 = vld.sshfl [vmem:[#allocation1 + $0x8] sm:$0xff pattern:$0x73625140] }
 0x154   :  { %1652 = vmatpush.msrb.mxu3 %v814_v36  ;;  %1594 = vmatpush.msrb.mxu0 %v514_v37  ;;  %v263_v36 = vld [vmem:[#allocation6 + $0x5c8] sm:$0xff]  ;;  %v353_v37 = vld [vmem:[#allocation6 + $0x898] sm:$0xff] }
 0x155   :  { %1613 = vmatpush.msrb.mxu1 %v616_v27  ;;  %1634 = vmatpush.msrb.mxu2 %v706_v39  ;;  %v455_v27 = vld [vmem:[#allocation6 + $0xbc8] sm:$0xff] }
 0x156   :  { %1653 = vmatpush.msrb.mxu3 %v808_v40  ;;  %1595 = vmatpush.msrb.mxu0 %v508_v41  ;;  %v155_v40 = vld [vmem:[#allocation6 + $0x268] sm:$0xff]  ;;  %v257_v41 = vld [vmem:[#allocation6 + $0x598] sm:$0xff] }
 0x157   :  { %1614 = vmatpush.msrb.mxu1 %v610_v42  ;;  %1635 = vmatpush.msrb.mxu2 %v700_v43  ;;  %v347_v43 = vld [vmem:[#allocation6 + $0x868] sm:$0xff] }
 0x158   :  { %1654 = vmatpush.msrb.mxu3 %v802_v44  ;;  %1596 = vmatpush.msrb.mxu0 %v502_v45  ;;  %v449_v44 = vld [vmem:[#allocation6 + $0xb98] sm:$0xff] }
 0x159   :  { %1615 = vmatpush.msrb.mxu1 %v604_v46  ;;  %1636 = vmatpush.msrb.mxu2 %v694_v47  ;;  %v2252_v46 = vld.sshfl [vmem:[#allocation1 + $0x30] sm:$0xff pattern:$0x73625140] }
 0x15a   :  { %1655 = vmatpush.msrb.mxu3 %v796_v48  ;;  %1597 = vmatpush.msrb.mxu0 %v496_v49  ;;  %v149_v47 = vld [vmem:[#allocation6 + $0x238] sm:$0xff]  ;;  %v251_v48 = vld [vmem:[#allocation6 + $0x568] sm:$0xff] }
 0x15b   :  { %1616 = vmatpush.msrb.mxu1 %v598_v52  ;;  %1637 = vmatpush.msrb.mxu2 %v688_v53  ;;  %v1204_v62 = vpop.f32.mrf.mxu0  ;;  %v341_v49 = vld [vmem:[#allocation6 + $0x838] sm:$0xff]  ;;  %v443_v52 = vld [vmem:[#allocation6 + $0xb68] sm:$0xff] }
 0x15c   :  { %1656 = vmatpush.msrb.mxu3 %v790_v54  ;;  %1598 = vmatpush.msrb.mxu0 %v490_v56  ;;  %v2255_v53 = vld.sshfl [vmem:[#allocation1 + $0x20] sm:$0xff pattern:$0x73625140]  ;;  %v2258_v54 = vld.sshfl [vmem:[#allocation1 + $0x38] sm:$0xff pattern:$0x73625140] }
 0x15d   :  { %1617 = vmatpush.msrb.mxu1 %v592_v26  ;;  %1638 = vmatpush.msrb.mxu2 %v682_v58  ;;  %v143_v56 = vld [vmem:[#allocation6 + $0x208] sm:$0xff]  ;;  %v245_v26 = vld [vmem:[#allocation6 + $0x538] sm:$0xff] }
 0x15e   :  { %1657 = vmatpush.msrb.mxu3 %v784_v59  ;;  %1599 = vmatpush.msrb.mxu0 %v484_v61  ;;  %v1224_v6 = vpop.f32.mrf.mxu1  ;;  %v335_v58 = vld [vmem:[#allocation6 + $0x808] sm:$0xff]  ;;  %v437_v59 = vld [vmem:[#allocation6 + $0xb38] sm:$0xff] }
 0x15f   :  { %1618 = vmatpush.msrb.mxu1 %v586_v16  ;;  %1639 = vmatpush.msrb.mxu2 %v676_v0  ;;  %v1225_v9 = vadd.f32 %v1224_v6, %v1204_v62  ;;  %v1244_v10 = vpop.f32.mrf.mxu2  ;;  %v137_v61 = vld [vmem:[#allocation6 + $0x1d8] sm:$0xff]  ;;  %v2261_v62 = vld.sshfl [vmem:[#allocation1 + $0x28] sm:$0xff pattern:$0x73625140]  ;;  %v239_v16 = vld [vmem:[#allocation6 + $0x508] sm:$0xff] }
 0x160   :  { %1658 = vmatpush.msrb.mxu3 %v778_v3  ;;  %1600 = vmatpush.msrb.mxu0 %v478_v34  ;;  %v329_v0 = vld [vmem:[#allocation6 + $0x7d8] sm:$0xff]  ;;  %v431_v3 = vld [vmem:[#allocation6 + $0xb08] sm:$0xff] }
 0x161   :  { %1619 = vmatpush.msrb.mxu1 %v580_v4  ;;  %1640 = vmatpush.msrb.mxu2 %v670_v5  ;;  %v1245_v14 = vadd.f32 %v1244_v10, %v1225_v9  ;;  %v131_v34 = vld [vmem:[#allocation6 + $0x1a8] sm:$0xff]  ;;  %v233_v4 = vld [vmem:[#allocation6 + $0x4d8] sm:$0xff] }
 0x162   :  { %1659 = vmatpush.msrb.mxu3 %v772_v8  ;;  %1601 = vmatpush.msrb.mxu0 %v472_v38  ;;  %v1264_v60 = vpop.f32.mrf.mxu3  ;;  %v323_v5 = vld [vmem:[#allocation6 + $0x7a8] sm:$0xff]  ;;  %v425_v6 = vld [vmem:[#allocation6 + $0xad8] sm:$0xff] }
 0x163   :  { %1620 = vmatpush.msrb.mxu1 %v574_v11  ;;  %1641 = vmatpush.msrb.mxu2 %v664_v12  ;;  %v1265_v19 = vadd.f32 %v1264_v60, %v1245_v14  ;;  %v125_v8 = vld [vmem:[#allocation6 + $0x178] sm:$0xff]  ;;  %v227_v38 = vld [vmem:[#allocation6 + $0x4a8] sm:$0xff] }
 0x164   :  { %1660 = vmatpush.msrb.mxu3 %v766_v13  ;;  %1563 = vmatmul.f32.vlgmr.msra.gmra.mxu2 %v2238_v55  ;;  %v317_v9 = vld [vmem:[#allocation6 + $0x778] sm:$0xff]  ;;  %v419_v10 = vld [vmem:[#allocation6 + $0xaa8] sm:$0xff] }
 0x165   :  { %1602 = vmatpush.msrb.mxu0 %v466_v15  ;;  %1621 = vmatpush.msrb.mxu1 %v568_v51  ;;  %v1284_v2 = vpop.f32.mrf.mxu0  ;;  %v119_v11 = vld [vmem:[#allocation6 + $0x148] sm:$0xff]  ;;  %v221_v12 = vld [vmem:[#allocation6 + $0x478] sm:$0xff] }
 0x166   :  { %1642 = vmatpush.msrb.mxu2 %v658_v17  ;;  %1661 = vmatpush.msrb.mxu3 %v760_v18  ;;  %v1285_v7 = vadd.f32 %v1284_v2, %v1265_v19  ;;  %v311_v13 = vld [vmem:[#allocation6 + $0x748] sm:$0xff]  ;;  %v413_v14 = vld [vmem:[#allocation6 + $0xa78] sm:$0xff] }
 0x167   :  { %1523 = vmatmul.f32.vlgmr.msra.gmra.mxu0 %v2241_v24  ;;  %1583 = vmatmul.f32.vlgmr.msra.gmra.mxu3 %v2244_v25  ;;  %v113_v15 = vld [vmem:[#allocation6 + $0x118] sm:$0xff]  ;;  %v215_v51 = vld [vmem:[#allocation6 + $0x448] sm:$0xff] }
 0x168   :  { %1667 = vmatpush.msra.mxu0 %v173_v1  ;;  %1707 = vmatpush.msra.mxu2 %v365_v57  ;;  %v1304_v30 = vpop.f32.mrf.mxu1  ;;  %v305_v60 = vld [vmem:[#allocation6 + $0x718] sm:$0xff]  ;;  %v407_v17 = vld [vmem:[#allocation6 + $0xa48] sm:$0xff] }
 0x169   :  { %1622 = vmatpush.msrb.mxu1 %v562_v21  ;;  %1662 = vmatpush.msrb.mxu3 %v754_v23  ;;  %v1305_v20 = vadd.f32 %v1304_v30, %v1285_v7  ;;  %v1324_v22 = vpop.f32.mrf.mxu2  ;;  %v107_v18 = vld [vmem:[#allocation6 + $0xe8] sm:$0xff]  ;;  %v209_v19 = vld [vmem:[#allocation6 + $0x418] sm:$0xff] }
 0x16a   :  { %1543 = vmatmul.f32.vlgmr.msra.gmra.mxu1 %v2247_v35  ;;  %1668 = vmatpush.msra.mxu0 %v167_v63  ;;  %v299_v1 = vld [vmem:[#allocation6 + $0x6e8] sm:$0xff]  ;;  %v401_v57 = vld [vmem:[#allocation6 + $0xa18] sm:$0xff] }
 0x16b   :  { %1687 = vmatpush.msra.mxu1 %v269_v28  ;;  %1708 = vmatpush.msra.mxu2 %v359_v29  ;;  %v1325_v39 = vadd.f32 %v1324_v22, %v1305_v20  ;;  %v101_v2 = vld [vmem:[#allocation6 + $0xb8] sm:$0xff]  ;;  %v203_v21 = vld [vmem:[#allocation6 + $0x3e8] sm:$0xff] }
 0x16c   :  { %1727 = vmatpush.msra.mxu3 %v461_v31  ;;  %1669 = vmatpush.msra.mxu0 %v161_v33  ;;  %v1344_v42 = vpop.f32.mrf.mxu3  ;;  %v293_v23 = vld [vmem:[#allocation6 + $0x6b8] sm:$0xff]  ;;  %v395_v7 = vld [vmem:[#allocation6 + $0x9e8] sm:$0xff] }
 0x16d   :  { %1688 = vmatpush.msra.mxu1 %v263_v36  ;;  %1709 = vmatpush.msra.mxu2 %v353_v37  ;;  %v2250_v45 = vadd.f32 %v1344_v42, %v1325_v39  ;;  %v95_v63 = vld [vmem:[#allocation6 + $0x88] sm:$0xff]  ;;  %v197_v28 = vld [vmem:[#allocation6 + $0x3b8] sm:$0xff] }
 0x16e   :  { %1728 = vmatpush.msra.mxu3 %v455_v27  ;;  %1643 = vmatmul.f32.vlgmr.msrb.gmra.mxu2 %v2252_v46  ;;  %v287_v29 = vld [vmem:[#allocation6 + $0x688] sm:$0xff]  ;;  %v389_v30 = vld [vmem:[#allocation6 + $0x9b8] sm:$0xff] }
 0x16f   :  { %1670 = vmatpush.msra.mxu0 %v155_v40  ;;  %1689 = vmatpush.msra.mxu1 %v257_v41  ;;  %v89_v31 = vld [vmem:[#allocation6 + $0x58] sm:$0xff]  ;;  %v191_v33 = vld [vmem:[#allocation6 + $0x388] sm:$0xff] }
 0x170   :  { %1710 = vmatpush.msra.mxu2 %v347_v43  ;;  %1729 = vmatpush.msra.mxu3 %v449_v44  ;;  %v281_v20 = vld [vmem:[#allocation6 + $0x658] sm:$0xff]  ;;  %v383_v22 = vld [vmem:[#allocation6 + $0x988] sm:$0xff] }
 0x171   :  { %1603 = vmatmul.f32.vlgmr.msrb.gmra.mxu0 %v2255_v53  ;;  %1663 = vmatmul.f32.vlgmr.msrb.gmra.mxu3 %v2258_v54  ;;  %v83_v36 = vld [vmem:[#allocation6 + $0x28] sm:$0xff]  ;;  %v185_v37 = vld [vmem:[#allocation6 + $0x358] sm:$0xff] }
 0x172   :  { %1671 = vmatpush.msra.mxu0 %v149_v47  ;;  %1690 = vmatpush.msra.mxu1 %v251_v48  ;;  %v275_v27 = vld [vmem:[#allocation6 + $0x628] sm:$0xff]  ;;  %v377_v39 = vld [vmem:[#allocation6 + $0x958] sm:$0xff] }
 0x173   :  { %1711 = vmatpush.msra.mxu2 %v341_v49  ;;  %1730 = vmatpush.msra.mxu3 %v443_v52  ;;  %v557_v40 = vld [vmem:[#allocation6 + $0xef8] sm:$0xff]  ;;  %v179_v42 = vld [vmem:[#allocation6 + $0x328] sm:$0xff] }
 0x174   :  { %1623 = vmatmul.f32.vlgmr.msrb.gmra.mxu1 %v2261_v62  ;;  %1672 = vmatpush.msra.mxu0 %v143_v56  ;;  %v749_v41 = vld [vmem:[#allocation6 + $0x14f8] sm:$0xff]  ;;  %v371_v43 = vld [vmem:[#allocation6 + $0x928] sm:$0xff] }
 0x175   :  { %1691 = vmatpush.msra.mxu1 %v245_v26  ;;  %1712 = vmatpush.msra.mxu2 %v335_v58  ;;  %v551_v44 = vld [vmem:[#allocation6 + $0xec8] sm:$0xff]  ;;  %v653_v47 = vld [vmem:[#allocation6 + $0x11f8] sm:$0xff] }
 0x176   :  { %1731 = vmatpush.msra.mxu3 %v437_v59  ;;  %1673 = vmatpush.msra.mxu0 %v137_v61  ;;  %v743_v48 = vld [vmem:[#allocation6 + $0x14c8] sm:$0xff]  ;;  %v845_v49 = vld [vmem:[#allocation6 + $0x17f8] sm:$0xff] }
 0x177   :  { %1692 = vmatpush.msra.mxu1 %v239_v16  ;;  %1713 = vmatpush.msra.mxu2 %v329_v0  ;;  %v545_v52 = vld [vmem:[#allocation6 + $0xe98] sm:$0xff]  ;;  %v647_v56 = vld [vmem:[#allocation6 + $0x11c8] sm:$0xff] }
 0x178   :  { %1732 = vmatpush.msra.mxu3 %v431_v3  ;;  %1674 = vmatpush.msra.mxu0 %v131_v34  ;;  %v737_v26 = vld [vmem:[#allocation6 + $0x1498] sm:$0xff]  ;;  %v839_v58 = vld [vmem:[#allocation6 + $0x17c8] sm:$0xff] }
 0x179   :  { %1693 = vmatpush.msra.mxu1 %v233_v4  ;;  %1714 = vmatpush.msra.mxu2 %v323_v5  ;;  %v539_v59 = vld [vmem:[#allocation6 + $0xe68] sm:$0xff]  ;;  %v641_v61 = vld [vmem:[#allocation6 + $0x1198] sm:$0xff] }
 0x17a   :  { %1733 = vmatpush.msra.mxu3 %v425_v6  ;;  %1675 = vmatpush.msra.mxu0 %v125_v8  ;;  %v731_v16 = vld [vmem:[#allocation6 + $0x1468] sm:$0xff]  ;;  %v833_v0 = vld [vmem:[#allocation6 + $0x1798] sm:$0xff] }
 0x17b   :  { %1694 = vmatpush.msra.mxu1 %v227_v38  ;;  %1715 = vmatpush.msra.mxu2 %v317_v9  ;;  %v533_v3 = vld [vmem:[#allocation6 + $0xe38] sm:$0xff]  ;;  %v635_v34 = vld [vmem:[#allocation6 + $0x1168] sm:$0xff] }
 0x17c   :  { %1734 = vmatpush.msra.mxu3 %v419_v10  ;;  %1676 = vmatpush.msra.mxu0 %v119_v11  ;;  %v725_v4 = vld [vmem:[#allocation6 + $0x1438] sm:$0xff]  ;;  %v827_v5 = vld [vmem:[#allocation6 + $0x1768] sm:$0xff] }
 0x17d   :  { %1695 = vmatpush.msra.mxu1 %v221_v12  ;;  %1716 = vmatpush.msra.mxu2 %v311_v13  ;;  %v527_v6 = vld [vmem:[#allocation6 + $0xe08] sm:$0xff]  ;;  %v629_v8 = vld [vmem:[#allocation6 + $0x1138] sm:$0xff] }
 0x17e   :  { %1735 = vmatpush.msra.mxu3 %v413_v14  ;;  %1677 = vmatpush.msra.mxu0 %v113_v15  ;;  %v719_v38 = vld [vmem:[#allocation6 + $0x1408] sm:$0xff]  ;;  %v821_v9 = vld [vmem:[#allocation6 + $0x1738] sm:$0xff] }
 0x17f   :  { %1696 = vmatpush.msra.mxu1 %v215_v51  ;;  %1717 = vmatpush.msra.mxu2 %v305_v60  ;;  %v521_v10 = vld [vmem:[#allocation6 + $0xdd8] sm:$0xff]  ;;  %v623_v11 = vld [vmem:[#allocation6 + $0x1108] sm:$0xff] }
 0x180   :  { %1736 = vmatpush.msra.mxu3 %v407_v17  ;;  %1678 = vmatpush.msra.mxu0 %v107_v18  ;;  %v713_v12 = vld [vmem:[#allocation6 + $0x13d8] sm:$0xff]  ;;  %v815_v13 = vld [vmem:[#allocation6 + $0x1708] sm:$0xff] }
 0x181   :  { %1697 = vmatpush.msra.mxu1 %v209_v19  ;;  %1718 = vmatpush.msra.mxu2 %v299_v1  ;;  %v515_v14 = vld [vmem:[#allocation6 + $0xda8] sm:$0xff]  ;;  %v617_v15 = vld [vmem:[#allocation6 + $0x10d8] sm:$0xff] }
 0x182   :  { %1737 = vmatpush.msra.mxu3 %v401_v57  ;;  %1679 = vmatpush.msra.mxu0 %v101_v2  ;;  %v707_v51 = vld [vmem:[#allocation6 + $0x13a8] sm:$0xff]  ;;  %v809_v60 = vld [vmem:[#allocation6 + $0x16d8] sm:$0xff] }
 0x183   :  { %1698 = vmatpush.msra.mxu1 %v203_v21  ;;  %1719 = vmatpush.msra.mxu2 %v293_v23  ;;  %v509_v17 = vld [vmem:[#allocation6 + $0xd78] sm:$0xff]  ;;  %v611_v18 = vld [vmem:[#allocation6 + $0x10a8] sm:$0xff] }
 0x184   :  { %1738 = vmatpush.msra.mxu3 %v395_v7  ;;  %1680 = vmatpush.msra.mxu0 %v95_v63  ;;  %v701_v19 = vld [vmem:[#allocation6 + $0x1378] sm:$0xff]  ;;  %v803_v1 = vld [vmem:[#allocation6 + $0x16a8] sm:$0xff] }
 0x185   :  { %1699 = vmatpush.msra.mxu1 %v197_v28  ;;  %1720 = vmatpush.msra.mxu2 %v287_v29  ;;  %v503_v57 = vld [vmem:[#allocation6 + $0xd48] sm:$0xff]  ;;  %v605_v21 = vld [vmem:[#allocation6 + $0x1078] sm:$0xff] }
 0x186   :  { %1739 = vmatpush.msra.mxu3 %v389_v30  ;;  %1681 = vmatpush.msra.mxu0 %v89_v31  ;;  %v695_v23 = vld [vmem:[#allocation6 + $0x1348] sm:$0xff]  ;;  %v797_v7 = vld [vmem:[#allocation6 + $0x1678] sm:$0xff] }
 0x187   :  { %1700 = vmatpush.msra.mxu1 %v191_v33  ;;  %1721 = vmatpush.msra.mxu2 %v281_v20  ;;  %v497_v63 = vld [vmem:[#allocation6 + $0xd18] sm:$0xff]  ;;  %v599_v28 = vld [vmem:[#allocation6 + $0x1048] sm:$0xff] }
 0x188   :  { %1740 = vmatpush.msra.mxu3 %v383_v22  ;;  %1682 = vmatpush.msra.mxu0 %v83_v36  ;;  %v689_v29 = vld [vmem:[#allocation6 + $0x1318] sm:$0xff]  ;;  %v791_v31 = vld [vmem:[#allocation6 + $0x1648] sm:$0xff] }
 0x189   :  { %1701 = vmatpush.msra.mxu1 %v185_v37  ;;  %1722 = vmatpush.msra.mxu2 %v275_v27  ;;  %v491_v22 = vld [vmem:[#allocation6 + $0xce8] sm:$0xff]  ;;  %v593_v36 = vld [vmem:[#allocation6 + $0x1018] sm:$0xff] }
 0x18a   :  { %1741 = vmatpush.msra.mxu3 %v377_v39  ;;  %1747 = vmatpush.msrb.mxu0 %v557_v40  ;;  %v683_v37 = vld [vmem:[#allocation6 + $0x12e8] sm:$0xff]  ;;  %v785_v27 = vld [vmem:[#allocation6 + $0x1618] sm:$0xff] }
 0x18b   :  { %1787 = vmatpush.msrb.mxu2 %v749_v41  ;;  %1702 = vmatpush.msra.mxu1 %v179_v42  ;;  %v485_v41 = vld [vmem:[#allocation6 + $0xcb8] sm:$0xff]  ;;  %v587_v42 = vld [vmem:[#allocation6 + $0xfe8] sm:$0xff] }
 0x18c   :  { %1742 = vmatpush.msra.mxu3 %v371_v43  ;;  %1748 = vmatpush.msrb.mxu0 %v551_v44  ;;  %v677_v44 = vld [vmem:[#allocation6 + $0x12b8] sm:$0xff] }
 0x18d   :  { %1767 = vmatpush.msrb.mxu1 %v653_v47  ;;  %1788 = vmatpush.msrb.mxu2 %v743_v48  ;;  %v779_v47 = vld [vmem:[#allocation6 + $0x15e8] sm:$0xff] }
 0x18e   :  { %1807 = vmatpush.msrb.mxu3 %v845_v49  ;;  %1749 = vmatpush.msrb.mxu0 %v545_v52  ;;  %v479_v48 = vld [vmem:[#allocation6 + $0xc88] sm:$0xff]  ;;  %v581_v52 = vld [vmem:[#allocation6 + $0xfb8] sm:$0xff] }
 0x18f   :  { %1768 = vmatpush.msrb.mxu1 %v647_v56  ;;  %1789 = vmatpush.msrb.mxu2 %v737_v26  ;;  %v773_v26 = vld [vmem:[#allocation6 + $0x15b8] sm:$0xff] }
 0x190   :  { %1808 = vmatpush.msrb.mxu3 %v839_v58  ;;  %1750 = vmatpush.msrb.mxu0 %v539_v59  ;;  %v473_v58 = vld [vmem:[#allocation6 + $0xc58] sm:$0xff]  ;;  %v575_v59 = vld [vmem:[#allocation6 + $0xf88] sm:$0xff] }
 0x191   :  { %1769 = vmatpush.msrb.mxu1 %v641_v61  ;;  %1790 = vmatpush.msrb.mxu2 %v731_v16  ;;  %v665_v61 = vld [vmem:[#allocation6 + $0x1258] sm:$0xff] }
 0x192   :  { %1809 = vmatpush.msrb.mxu3 %v833_v0  ;;  %1751 = vmatpush.msrb.mxu0 %v533_v3 }
 0x193   :  { %1770 = vmatpush.msrb.mxu1 %v635_v34  ;;  %1791 = vmatpush.msrb.mxu2 %v725_v4  ;;  %v569_v34 = vld [vmem:[#allocation6 + $0xf58] sm:$0xff]  ;;  %v659_v4 = vld [vmem:[#allocation6 + $0x1228] sm:$0xff] }
 0x194   :  { %1810 = vmatpush.msrb.mxu3 %v827_v5  ;;  %1752 = vmatpush.msrb.mxu0 %v527_v6  ;;  %v761_v5 = vld [vmem:[#allocation6 + $0x1558] sm:$0xff] }
 0x195   :  { %1771 = vmatpush.msrb.mxu1 %v629_v8  ;;  %1792 = vmatpush.msrb.mxu2 %v719_v38  ;;  %v1962_v8 = vld [vmem:[#allocation8 + $0x1] ss:$0 sm:$0xff] }
 0x196   :  { %1811 = vmatpush.msrb.mxu3 %v821_v9  ;;  %1753 = vmatpush.msrb.mxu0 %v521_v10  ;;  %v755_v9 = vld [vmem:[#allocation6 + $0x1528] sm:$0xff] }
 0x197   :  { %1772 = vmatpush.msrb.mxu1 %v623_v11  ;;  %1793 = vmatpush.msrb.mxu2 %v713_v12 }
 0x198   :  { %1812 = vmatpush.msrb.mxu3 %v815_v13  ;;  %1754 = vmatpush.msrb.mxu0 %v515_v14  ;;  %v1830_v13 = vmul.f32 %v2212_v50, %v2212_v50 }
 0x199   :  { %1773 = vmatpush.msrb.mxu1 %v617_v15  ;;  %1794 = vmatpush.msrb.mxu2 %v707_v51  ;;  %v1364_v2 = vpop.f32.mrf.mxu0 }
 0x19a   :  { %1813 = vmatpush.msrb.mxu3 %v809_v60  ;;  %1755 = vmatpush.msrb.mxu0 %v509_v17  ;;  %v1832_v14 = vsel %vm1831_vm0, %v1830_v13, 0.0 }
 0x19b   :  { %1774 = vmatpush.msrb.mxu1 %v611_v18  ;;  %1795 = vmatpush.msrb.mxu2 %v701_v19 }
 0x19c   :  { %1814 = vmatpush.msrb.mxu3 %v803_v1  ;;  %1756 = vmatpush.msrb.mxu0 %v503_v57  ;;  %v1384_v30 = vpop.f32.mrf.mxu1 }
 0x19d   :  { %1775 = vmatpush.msrb.mxu1 %v605_v21  ;;  %1796 = vmatpush.msrb.mxu2 %v695_v23  ;;  %v1385_v33 = vadd.f32 %v1384_v30, %v1364_v2  ;;  %v1404_v20 = vpop.f32.mrf.mxu2 }
 0x19e   :  { %1815 = vmatpush.msrb.mxu3 %v797_v7  ;;  %1757 = vmatpush.msrb.mxu0 %v497_v63 }
 0x19f   :  { %1776 = vmatpush.msrb.mxu1 %v599_v28  ;;  %1797 = vmatpush.msrb.mxu2 %v689_v29  ;;  %v1405_v39 = vadd.f32 %v1404_v20, %v1385_v33 }
 0x1a0   :  { %1816 = vmatpush.msrb.mxu3 %v791_v31  ;;  %1723 = vmatmul.f32.vlgmr.msra.gmra.mxu2 %v2238_v55  ;;  %v1424_v40 = vpop.f32.mrf.mxu3  ;;  %v671_v55 = vld [vmem:[#allocation6 + $0x1288] sm:$0xff] }
 0x1a1   :  { %1758 = vmatpush.msrb.mxu0 %v491_v22  ;;  %1777 = vmatpush.msrb.mxu1 %v593_v36  ;;  %v1425_v43 = vadd.f32 %v1424_v40, %v1405_v39 }
 0x1a2   :  { %1798 = vmatpush.msrb.mxu2 %v683_v37  ;;  %1817 = vmatpush.msrb.mxu3 %v785_v27 }
 0x1a3   :  { %1683 = vmatmul.f32.vlgmr.msra.gmra.mxu0 %v2241_v24  ;;  %1743 = vmatmul.f32.vlgmr.msra.gmra.mxu3 %v2244_v25  ;;  %v1444_v49 = vpop.f32.mrf.mxu0  ;;  %v767_v24 = vld [vmem:[#allocation6 + $0x1588] sm:$0xff] }
 0x1a4   :  { %1759 = vmatpush.msrb.mxu0 %v485_v41  ;;  %1778 = vmatpush.msrb.mxu1 %v587_v42  ;;  %v1445_v56 = vadd.f32 %v1444_v49, %v1425_v43  ;;  %v467_v25 = vld [vmem:[#allocation6 + $0xc28] sm:$0xff] }
 0x1a5   :  { %1799 = vmatpush.msrb.mxu2 %v677_v44  ;;  %1818 = vmatpush.msrb.mxu3 %v779_v47 }
 0x1a6   :  { %1703 = vmatmul.f32.vlgmr.msra.gmra.mxu1 %v2247_v35  ;;  %1760 = vmatpush.msrb.mxu0 %v479_v48  ;;  %v1464_v16 = vpop.f32.mrf.mxu1  ;;  %v563_v35 = vld [vmem:[#allocation6 + $0xf28] sm:$0xff]  ;;  %v1963_v48 = vld [vmem:[#allocation8 + $0x2] ss:$0 sm:$0xff] }
 0x1a7   :  { %1779 = vmatpush.msrb.mxu1 %v581_v52  ;;  %1800 = vmatpush.msrb.mxu2 %v671_v55  ;;  %v1465_v0 = vadd.f32 %v1464_v16, %v1445_v56  ;;  %v1484_v3 = vpop.f32.mrf.mxu2 }
 0x1a8   :  { %1819 = vmatpush.msrb.mxu3 %v773_v26  ;;  %1761 = vmatpush.msrb.mxu0 %v473_v58 }
 0x1a9   :  { %1780 = vmatpush.msrb.mxu1 %v575_v59  ;;  %1801 = vmatpush.msrb.mxu2 %v665_v61  ;;  %v1485_v6 = vadd.f32 %v1484_v3, %v1465_v0  ;;  %v1838_v7 = vpop.xlane.xlu0 %1837 }
 0x1aa   :  { %1820 = vmatpush.msrb.mxu3 %v767_v24  ;;  %1762 = vmatpush.msrb.mxu0 %v467_v25  ;;  %v1504_v38 = vpop.f32.mrf.mxu3  ;;  %v1839_v40 = vsub.f32 %v2234_v32, %v1838_v7  ;;  %v1855_v32 = vmul.f32 %v2250_v45, %v2250_v45 }
 0x1ab   :  { %1781 = vmatpush.msrb.mxu1 %v569_v34  ;;  %1802 = vmatpush.msrb.mxu2 %v659_v4  ;;  %v1505_v10 = vadd.f32 %v1504_v38, %v1485_v6 }
 0x1ac   :  { %1821 = vmatpush.msrb.mxu3 %v761_v5  ;;  %1763 = vmatmul.f32.vlgmr.msrb.gmra.mxu0 %v2255_v53  ;;  %v1840_v49 = vmul.f32 1.442695, %v1839_v40  ;;  %v1856_v61 = vsel %vm1831_vm0, %v1855_v32, 0.0 }
 0x1ad   :  { %1803 = vmatmul.f32.vlgmr.msrb.gmra.mxu2 %v2252_v46  ;;  %1782 = vmatpush.msrb.mxu1 %v563_v35  ;;  %v1854_v11 = vadd.f32 %v1962_v8, %v1505_v10 }
 0x1ae   :  { %1822 = vmatpush.msrb.mxu3 %v755_v9  ;;  %1783 = vmatmul.f32.vlgmr.msrb.gmra.mxu1 %v2261_v62 }
 0x1af   :  { %1823 = vmatmul.f32.vlgmr.msrb.gmra.mxu3 %v2258_v54  ;;  %v1860_v12 = vsel %vm1831_vm0, %v1854_v11, -inf }
 0x1b0   :  { %1861 = vmax.xlane.f32.xlu0 %v1860_v12 }
 0x1b8   :  { %1833 = vadd.xlane.f32.xlu0 %v1832_v14  ;;  %v1849_v14 = vstv %s1848_s3 }
 0x1e4   :  { %v1524_v15 = vpop.f32.mrf.mxu0 }
 0x1e7   :  { %v1544_v53 = vpop.f32.mrf.mxu1  ;;  %v1564_v51 = vpop.f32.mrf.mxu2 }
 0x1e8   :  { %v1545_v46 = vadd.f32 %v1544_v53, %v1524_v15 }
 0x1ea   :  { %v1565_v60 = vadd.f32 %v1564_v51, %v1545_v46  ;;  %v1584_v17 = vpop.f32.mrf.mxu3 }
 0x1ec   :  { %v1585_v18 = vadd.f32 %v1584_v17, %v1565_v60 }
 0x1ee   :  { %v1604_v19 = vpop.f32.mrf.mxu0 }
 0x1ef   :  { %v1605_v62 = vadd.f32 %v1604_v19, %v1585_v18 }
 0x1f1   :  { %v1624_v1 = vpop.f32.mrf.mxu1  ;;  %v1644_v54 = vpop.f32.mrf.mxu2 }
 0x1f2   :  { %v1625_v57 = vadd.f32 %v1624_v1, %v1605_v62 }
 0x1f4   :  { %v1645_v2 = vadd.f32 %v1644_v54, %v1625_v57  ;;  %v1664_v21 = vpop.f32.mrf.mxu3  ;;  %v1908_v57 = vstv %s1952_s12 }
 0x1f6   :  { %v1665_v23 = vadd.f32 %v1664_v21, %v1645_v2 }
 0x1f8   :  { %v1890_v34 = vmul.f32 %v1665_v23, %v1665_v23 }
 0x1fa   :  { %v1891_v4 = vsel %vm1831_vm0, %v1890_v34, 0.0 }
 0x220   :  { %v1684_v50 = vpop.f32.mrf.mxu0 }
 0x223   :  { %v1704_v63 = vpop.f32.mrf.mxu1  ;;  %v1724_v28 = vpop.f32.mrf.mxu2 }
 0x224   :  { %v1705_v29 = vadd.f32 %v1704_v63, %v1684_v50  ;;  %v1862_v30 = vpop.xlane.xlu0 %1861 }
 0x225   :  { %v1863_v31 = vsub.f32 %v1854_v11, %v1862_v30  ;;  %v1873_v11 = vstv %s1951_s2  ;;  %v2124_v30 = vmov 0  }
 0x226   :  { %v1725_v33 = vadd.f32 %v1724_v28, %v1705_v29  ;;  %v1744_v20 = vpop.f32.mrf.mxu3 }
 0x227   :  { %v1864_v22 = vmul.f32 1.442695, %v1863_v31 }
 0x228   :  { %v1745_v36 = vadd.f32 %v1744_v20, %v1725_v33 }
 0x229   :  { %v1764_v37 = vpop.f32.mrf.mxu0  ;;  %1964 = vpow2.f32 %v1864_v22 }
 0x22a   :  { %v1765_v27 = vadd.f32 %v1764_v37, %v1745_v36  ;;  %1966 = vpow2.f32 %v1840_v49 }
 0x22b   :  { %v1784_v39 = vpop.f32.mrf.mxu1 }
 0x22c   :  { %v1785_v42 = vadd.f32 %v1784_v39, %v1765_v27  ;;  %v1834_v38 = vpop.xlane.xlu0 %1833 }
 0x22d   :  { %v1835_v12 = vmul.f32 -0.5, %v1834_v38 }
 0x22f   :  { %v1965_v41 = vpop.eup %1964  ;;  %v1850_v51 = vadd.f32 %v1849_v14, %v1835_v12 }
 0x230   :  { %v1804_v43 = vpop.f32.mrf.mxu2  ;;  %v1866_v44 = vsel %vm1831_vm0, %v1965_v41, 0.0  ;;  %v1967_v58 = vpop.eup %1966 }
 0x231   :  { %v1805_v47 = vadd.f32 %v1804_v43, %v1785_v42  ;;  %1867 = vadd.xlane.f32.xlu2 %v1866_v44  ;;  %v1842_v59 = vsel %vm1831_vm0, %v1967_v58, 0.0 }
 0x232   :  { %v1824_v52 = vpop.f32.mrf.mxu3 }
 0x233   :  { %v1825_v55 = vadd.f32 %v1824_v52, %v1805_v47 }
 0x235   :  { %v1889_v56 = vadd.f32 %v1963_v48, %v1825_v55 }
 0x237   :  { %v1895_v26 = vsel %vm1831_vm0, %v1889_v56, -inf }
 0x238   :  { %1896 = vmax.xlane.f32.xlu1 %v1895_v26 }
 0x240   :  { %1843 = vadd.xlane.f32.xlu1 %v1842_v59 }
 0x248   :  { %1857 = vadd.xlane.f32.xlu1 %v1856_v61 }
 0x2a4   :  { %v1868_v6 = vpop.xlane.xlu2 %1867 }
 0x2ab   :  { %v1897_v16 = vpop.xlane.xlu1 %1896 }
 0x2ac   :  { %v1898_v24 = vsub.f32 %v1889_v56, %v1897_v16 }
 0x2ae   :  { %v1899_v25 = vmul.f32 1.442695, %v1898_v24 }
 0x2b0   :  { %1968 = vpow2.f32 %v1899_v25 }
 0x2b3   :  { %v1844_v5 = vpop.xlane.xlu1 %1843 }
 0x2b4   :  { %1970 = vlog2.f32 %v1844_v5 }
 0x2b5   :  { %1972 = vlog2.f32 %v1868_v6 }
 0x2b6   :  { %v1969_v0 = vpop.eup %1968 }
 0x2b7   :  { %v1901_v3 = vsel %vm1831_vm0, %v1969_v0, 0.0 }
 0x2b8   :  { %1902 = vadd.xlane.f32.xlu2 %v1901_v3 }
 0x2ba   :  { %v1971_v45 = vpop.eup %1970 }
 0x2bb   :  { %v1858_v8 = vpop.xlane.xlu1 %1857  ;;  %v1973_v35 = vpop.eup %1972  ;;  %v1846_v9 = vmul.f32 0.6931472, %v1971_v45 }
 0x2bc   :  { %v1859_v10 = vmul.f32 -0.5, %v1858_v8  ;;  %v1870_v13 = vmul.f32 0.6931472, %v1973_v35 }
 0x2bd   :  { %v1847_v15 = vsub.f32 %v1839_v40, %v1846_v9 }
 0x2be   :  { %v1874_v53 = vadd.f32 %v1873_v11, %v1859_v10  ;;  %v1871_v46 = vsub.f32 %v1863_v31, %v1870_v13 }
 0x2bf   :  { %v1851_v60 = vadd.f32 %v1850_v51, %v1847_v15 }
 0x2c0   :  { %1892 = vadd.xlane.f32.xlu2 %v1891_v4  ;;  %v1875_v17 = vadd.f32 %v1874_v53, %v1871_v46  ;;  %vm1884_vm1 = vcmp.gt.f32.partialorder %v1874_v53, %v1850_v51 }
 0x2c1   :  { %v1885_v28 = vsel %vm1884_vm1, %v1874_v53, %v1850_v51  ;;  %v1886_v31 = vsel %vm1884_vm1, 1, %v2124_v30 }
 0x2c2   :  { %v1876_v19 = vmax.f32 %v1851_v60, %v1875_v17 }
 0x2c4   :  { %v1877_v1 = vsub.f32 %v1851_v60, %v1876_v19  ;;  %v1880_v21 = vsub.f32 %v1875_v17, %v1876_v19 }
 0x2c6   :  { %v1878_v63 = vmul.f32 1.442695, %v1877_v1  ;;  %v1881_v29 = vmul.f32 1.442695, %v1880_v21 }
 0x32b   :  { %v1903_v18 = vpop.xlane.xlu2 %1902 }
 0x32c   :  { %1974 = vlog2.f32 %v1903_v18 }
 0x32d   :  { %1976 = vpow2.f32 %v1878_v63 }
 0x32e   :  { %1978 = vpow2.f32 %v1881_v29 }
 0x332   :  { %v1975_v62 = vpop.eup %1974 }
 0x333   :  { %v1905_v54 = vmul.f32 0.6931472, %v1975_v62  ;;  %v1893_v2 = vpop.xlane.xlu2 %1892  ;;  %v1977_v40 = vpop.eup %1976 }
 0x334   :  { %v1894_v23 = vmul.f32 -0.5, %v1893_v2  ;;  %v1979_v41 = vpop.eup %1978 }
 0x335   :  { %v1906_v7 = vsub.f32 %v1898_v24, %v1905_v54  ;;  %v1883_v42 = vadd.f32 %v1979_v41, %v1977_v40 }
 0x336   :  { %v1909_v50 = vadd.f32 %v1908_v57, %v1894_v23 }
 0x338   :  { %v1910_v33 = vadd.f32 %v1909_v50, %v1906_v7  ;;  %vm1920_vm3 = vcmp.gt.f32.partialorder %v1909_v50, %v1885_v28 }
 0x339   :  { %v1921_v20 = vsel %vm1920_vm3, 2, %v1886_v31 }
 0x33a   :  { %v1911_v22 = vmax.f32 %v1876_v19, %v1910_v33  ;;  %1927 = vst.msk [vmem:[%s2296_s5] sm:$0x3] %vm1926_vm2, %v1921_v20 }
 0x33c   :  { %v1912_v36 = vsub.f32 %v1876_v19, %v1911_v22  ;;  %v1916_v37 = vsub.f32 %v1910_v33, %v1911_v22 }
 0x33e   :  { %v1913_v27 = vmul.f32 1.442695, %v1912_v36  ;;  %v1917_v39 = vmul.f32 1.442695, %v1916_v37 }
 0x340   :  { %1980 = vpow2.f32 %v1913_v27 }
 0x341   :  { %1982 = vpow2.f32 %v1917_v39 }
 0x346   :  { %v1981_v43 = vpop.eup %1980 }
 0x347   :  { %v1915_v44 = vmul.f32 %v1981_v43, %v1883_v42  ;;  %v1983_v47 = vpop.eup %1982 }
 0x349   :  { %v1919_v48 = vadd.f32 %v1983_v47, %v1915_v44 }
 0x34b   :  { %1984 = vlog2.f32 %v1919_v48 }
 0x351   :  { %v1985_v49 = vpop.eup %1984 }
 0x352   :  { %v1923_v52 = vmul.f32 0.6931472, %v1985_v49 }
 0x354   :  { %v1924_v55 = vadd.f32 %v1923_v52, %v1911_v22 }
 0x356   :  { %1925 = vst [vmem:[#allocation10] sm:$0x3] %v1924_v55 }
 0x357   :  { %1938 = dma.vmem_to_hbm [thread:$0]  %s1934_s16, 32, %s1936_s18, [#allocation4]  }
 0x358   :  { %2116 = dma.done.wait [#allocation4], 32  }
 0x359   :  { %2117 = vsyncadd [#allocation4], 4294967264 }
 0x35a   :  { %1947 = vsyncpa [#allocation3], 1 }
 0x35b   :  { %1948 = vsyncpa [#allocation7], 1 }
 0x35c   :  { %1949 = vsyncpa [#allocation4], 1 }
 0x35d   :  { %1950 = vsyncpa [#allocation5], 1 }

</bundles_post_ra>
